<compile_context>
chip_gen: v7x
topology: tpu7x:2x2x1
jax: 0.10.0
libtpu: 0.0.40
codegen_flags: <defaults>
</compile_context>

<pallas_src>
import functools

import jax
import jax.numpy as jnp
from jax import lax
from jax.experimental import pallas as pl
from jax.experimental.pallas import tpu as pltpu

HALO = 4  # halo-block rows (>= 3 rows are needed; 4 keeps block indices integral)


# ----------------------------------------------------------------------------
# Fused kernel: one batch element x one TH-row output tile per grid step.
# ----------------------------------------------------------------------------
def _down_sampling_kernel(xm_ref, xh_ref,
                          w1_dw_ref, w1_pw_ref, s1_ref, b1_ref,
                          w2_dw_ref, w2_pw_ref, s2_ref, b2_ref,
                          o_ref, *, th, ho, wo, we):
    t = pl.program_id(1)
    i0 = t * th                     # first output row of this tile
    r1 = th + 2                     # conv1 rows computed (incl. +-1 row halo)

    # Window of all 4 phases: rows [i0, i0+th+4) of the padded phase array.
    # Main block supplies th rows, the small halo block the next 4 rows.
    win = jnp.concatenate([xm_ref[...], xh_ref[...]], axis=1)  # (4, th+4, WP, cin)

    # --- depthwise 3x3, stride 2 (polyphase), f32 on the VPU -----------------
    w1 = w1_dw_ref[...]                                        # (9, cin)
    cin = w1.shape[1]
    acc1 = jnp.zeros((r1, we, cin), jnp.float32)
    for di in range(3):
        for dj in range(3):
            p = 2 * (di % 2) + (dj % 2)
            tap = win[p, di // 2: di // 2 + r1, dj // 2: dj // 2 + we, :]
            acc1 = acc1 + tap * w1[di * 3 + dj: di * 3 + dj + 1, :]

    # --- pointwise 1x1 #1: MXU, bf16 operands, f32 accumulate + BN + ReLU ----
    y1 = jnp.dot(acc1.reshape(r1 * we, cin).astype(jnp.bfloat16), w1_pw_ref[...],
                 preferred_element_type=jnp.float32)
    y1 = jnp.maximum(y1 * s1_ref[...] + b1_ref[...], 0.0)
    cout = y1.shape[-1]
    y1 = y1.reshape(r1, we, cout)

    # Halo rows/cols outside the image become EXACT zeros: they play the role
    # of the second conv's spatial zero padding (no pad scratch, no zero-fill).
    rows = i0 - 1 + lax.broadcasted_iota(jnp.int32, (r1, we, cout), 0)
    cols = -1 + lax.broadcasted_iota(jnp.int32, (r1, we, cout), 1)
    y1 = jnp.where((rows >= 0) & (rows < ho) & (cols >= 0) & (cols < wo), y1, 0.0)

    # --- depthwise 3x3, stride 1: taps are register-level shifted slices -----
    w2 = w2_dw_ref[...]                                        # (9, cout)
    acc2 = jnp.zeros((th, wo, cout), jnp.float32)
    for di in range(3):
        for dj in range(3):
            tap = y1[di: di + th, dj: dj + wo, :]
            acc2 = acc2 + tap * w2[di * 3 + dj: di * 3 + dj + 1, :]

    # --- pointwise 1x1 #2: MXU bf16 + folded BN + ReLU -----------------------
    y2 = jnp.dot(acc2.reshape(th * wo, cout).astype(jnp.bfloat16), w2_pw_ref[...],
                 preferred_element_type=jnp.float32)
    y2 = jnp.maximum(y2 * s2_ref[...] + b2_ref[...], 0.0)
    o_ref[...] = y2.reshape(th, wo, cout)


# ----------------------------------------------------------------------------
# Wrapper: NCHW in, NCHW out.  Layout prep is one transpose + one pad + one
# polyphase repack (true channel width); everything else is the pallas_call.
# ----------------------------------------------------------------------------
@jax.jit
def down_sampling_forward(x_nchw, kern):
    B, cin, H, W = x_nchw.shape
    cout = kern["s2"].shape[-1]
    assert H % 8 == 0 and W % 16 == 0, "demo kernel assumes H % 8 == 0, W % 16 == 0"
    Ho, Wo = H // 2, W // 2

    # Spatial tile (output rows) per grid step.  16 preferred at real sizes
    # (>=256-row MXU M per step, smaller halo re-read fraction).
    TH = 16 if Ho % 16 == 0 else (8 if Ho % 8 == 0 else 4)
    WE = Wo + 8            # conv1 computed over Wo+2 halo cols, rounded to x8
    HP = Ho + TH           # stored phase rows (tile-able by TH and HALO)
    WP = WE + 1            # stored phase cols

    # --- cheap layout prep at TRUE channel width ------------------------------
    x = jnp.transpose(x_nchw, (0, 2, 3, 1)).astype(jnp.float32)          # NHWC
    xpad = jnp.pad(x, ((0, 0), (3, 2 * HP - H - 3), (3, 2 * WP - W - 3), (0, 0)))
    # 2x2 polyphase pack: xph[b, 2r+c, i, j, :] = x[b, 2i+r-3, 2j+c-3, :]
    xph = (xpad.reshape(B, HP, 2, WP, 2, cin)
           .transpose(0, 2, 4, 1, 3, 5)
           .reshape(B, 4, HP, WP, cin))

    n_t = Ho // TH
    grid = (B, n_t)

    img_main = pl.BlockSpec((None, 4, TH, WP, cin), lambda b, t: (b, 0, t, 0, 0))
    img_halo = pl.BlockSpec((None, 4, HALO, WP, cin),
                            lambda b, t: (b, 0, (t + 1) * (TH // HALO), 0, 0))
    wdw1_spec = pl.BlockSpec((9, cin), lambda b, t: (0, 0))
    wpw1_spec = pl.BlockSpec((cin, cout), lambda b, t: (0, 0))
    wdw2_spec = pl.BlockSpec((9, cout), lambda b, t: (0, 0))
    wpw2_spec = pl.BlockSpec((cout, cout), lambda b, t: (0, 0))
    vec_spec = pl.BlockSpec((1, cout), lambda b, t: (0, 0))
    out_spec = pl.BlockSpec((None, TH, Wo, cout), lambda b, t: (b, t, 0, 0))

    # VMEM budget from the actual footprint (+ headroom), capped for v7x.
    bytes_in = 4 * (TH + HALO) * WP * cin * 4
    bytes_out = TH * Wo * cout * 4
    bytes_wts = (9 * cin + 9 * cout + 4 * cout) * 4 + (cin + cout) * cout * 2
    bytes_work = ((TH + 4) * WP * cin + (TH + 2) * WE * (cin + cout)
                  + TH * Wo * cout) * 4 * 2
    vmem_limit = 2 * (2 * (bytes_in + bytes_out) + bytes_wts) + bytes_work
    vmem_limit = int(min(max(2 * vmem_limit, 8 << 20), 56 << 20))

    out = pl.pallas_call(
        functools.partial(_down_sampling_kernel, th=TH, ho=Ho, wo=Wo, we=WE),
        out_shape=jax.ShapeDtypeStruct((B, Ho, Wo, cout), jnp.float32),
        grid_spec=pltpu.PrefetchScalarGridSpec(
            num_scalar_prefetch=0,
            grid=grid,
            in_specs=[img_main, img_halo,
                      wdw1_spec, wpw1_spec, vec_spec, vec_spec,
                      wdw2_spec, wpw2_spec, vec_spec, vec_spec],
            out_specs=out_spec),
        compiler_params=pltpu.CompilerParams(
            dimension_semantics=("parallel", "parallel"),
            vmem_limit_bytes=vmem_limit),
    )(xph, xph,
      kern["w1_dw"], kern["w1_pw"], kern["s1"], kern["b1"],
      kern["w2_dw"], kern["w2_pw"], kern["s2"], kern["b2"])

    return jnp.transpose(out, (0, 3, 1, 2))                              # NCHW


# ----------------------------------------------------------------------------
# Parameter init: raw params for the reference + one-time folded/reshaped
# kernel layout (BN fold, bf16 pointwise weights) outside the hot path.
# ----------------------------------------------------------------------------
def init_params(key, in_channels, out_channels):
    ks = jax.random.split(key, 12)
    w1_dw = jax.random.normal(ks[0], (3, 3, in_channels), jnp.float32) / 3.0
    w1_pw = (jax.random.normal(ks[1], (in_channels, out_channels), jnp.float32)
             / jnp.sqrt(float(in_channels)))
    w2_dw = jax.random.normal(ks[2], (3, 3, out_channels), jnp.float32) / 3.0
    w2_pw = (jax.random.normal(ks[3], (out_channels, out_channels), jnp.float32)
             / jnp.sqrt(float(out_channels)))
    # Pointwise weights live in bf16 (MXU-native); the reference uses the same
    # bf16-rounded values so the check isolates kernel indexing/fusion.
    w1_pw = w1_pw.astype(jnp.bfloat16)
    w2_pw = w2_pw.astype(jnp.bfloat16)

    def make_bn(kg, kb, km, kv, c):
        gamma = 1.0 + 0.1 * jax.random.normal(kg, (c,), jnp.float32)
        beta = 0.1 * jax.random.normal(kb, (c,), jnp.float32)
        mean = 0.1 * jax.random.normal(km, (c,), jnp.float32)
        var = jnp.abs(1.0 + 0.1 * jax.random.normal(kv, (c,), jnp.float32))
        return (gamma, beta, mean, var, 1e-5)

    bn1 = make_bn(ks[4], ks[5], ks[6], ks[7], out_channels)
    bn2 = make_bn(ks[8], ks[9], ks[10], ks[11], out_channels)

    raw = dict(w1_dw=w1_dw, w1_pw=w1_pw.astype(jnp.float32), bn1=bn1,
               w2_dw=w2_dw, w2_pw=w2_pw.astype(jnp.float32), bn2=bn2)

    def fold(bn):
        gamma, beta, mean, var, eps = bn
        scale = gamma / jnp.sqrt(var + eps)
        shift = beta - mean * scale
        return scale.reshape(1, -1), shift.reshape(1, -1)

    s1, b1 = fold(bn1)
    s2, b2 = fold(bn2)
    kern = dict(
        w1_dw=w1_dw.reshape(9, in_channels), w1_pw=w1_pw, s1=s1, b1=b1,
        w2_dw=w2_dw.reshape(9, out_channels), w2_pw=w2_pw, s2=s2, b2=b2,
    )
    return raw, kern


# ----------------------------------------------------------------------------
# Pure-JAX reference (lax grouped conv) matching the kernel's numerics:
# depthwise in f32, pointwise 1x1 with bf16 operands / f32 accumulation.
# ----------------------------------------------------------------------------
def reference_forward(x_nchw, raw):
    x = jnp.transpose(x_nchw, (0, 2, 3, 1)).astype(jnp.float32)

    def block(x, w_dw, w_pw, bn, stride):
        c = x.shape[-1]
        y = lax.conv_general_dilated(
            x, w_dw.reshape(3, 3, 1, c), (stride, stride), [(1, 1), (1, 1)],
            dimension_numbers=("NHWC", "HWIO", "NHWC"),
            feature_group_count=c)
        y = lax.conv_general_dilated(
            y.astype(jnp.bfloat16),
            w_pw.astype(jnp.bfloat16).reshape((1, 1) + w_pw.shape),
            (1, 1), [(0, 0), (0, 0)],
            dimension_numbers=("NHWC", "HWIO", "NHWC"),
            preferred_element_type=jnp.float32)
        gamma, beta, mean, var, eps = bn
        y = (y - mean) / jnp.sqrt(var + eps) * gamma + beta
        return jnp.maximum(y, 0.0)

    x = block(x, raw["w1_dw"], raw["w1_pw"], raw["bn1"], 2)
    x = block(x, raw["w2_dw"], raw["w2_pw"], raw["bn2"], 1)
    return jnp.transpose(x, (0, 3, 1, 2))


if __name__ == "__main__":
    key = jax.random.PRNGKey(0)
    k_x, k_p = jax.random.split(key)

    B, C_IN, C_OUT, H, W = 2, 4, 8, 16, 16
    x = jax.random.normal(k_x, (B, C_IN, H, W), jnp.float32)
    raw, kern = init_params(k_p, C_IN, C_OUT)

    out = jax.block_until_ready(down_sampling_forward(x, kern))
    ref = jax.block_until_ready(reference_forward(x, raw))

    assert out.shape == (B, C_OUT, H // 2, W // 2), out.shape
    err = float(jnp.max(jnp.abs(out - ref)))
    assert jnp.allclose(out, ref, rtol=1e-2, atol=1e-2), err
    print("KERNEL_OK")
</pallas_src>

<mosaic_0001>
module attributes {stable_mosaic.version = 11 : i64} {
  func.func @_down_sampling_kernel(%arg0: i32, %arg1: i32, %arg2: memref<1x4x8x17x4xf32, #tpu.memory_space<vmem>>, %arg3: memref<1x4x4x17x4xf32, #tpu.memory_space<vmem>>, %arg4: memref<9x4xf32, #tpu.memory_space<vmem>>, %arg5: memref<4x8xbf16, #tpu.memory_space<vmem>>, %arg6: memref<1x8xf32, #tpu.memory_space<vmem>>, %arg7: memref<1x8xf32, #tpu.memory_space<vmem>>, %arg8: memref<9x8xf32, #tpu.memory_space<vmem>>, %arg9: memref<8x8xbf16, #tpu.memory_space<vmem>>, %arg10: memref<1x8xf32, #tpu.memory_space<vmem>>, %arg11: memref<1x8xf32, #tpu.memory_space<vmem>>, %arg12: memref<1x8x8x8xf32, #tpu.memory_space<vmem>>) attributes {dimension_semantics = [#tpu.dimension_semantics<parallel>, #tpu.dimension_semantics<parallel>], iteration_bounds = array<i64: 2, 1>, scalar_prefetch = 0 : i64, scratch_operands = 0 : i64, tpu.core_type = #tpu.core_type<tc>, window_params = [{transform_indices = @transform_0, window_bounds = array<i64: 1, 4, 8, 17, 4>}, {transform_indices = @transform_1, window_bounds = array<i64: 1, 4, 4, 17, 4>}, {pipeline_mode = #tpu.pipeline_mode<synchronous>, transform_indices = @transform_2, window_bounds = array<i64: 9, 4>}, {pipeline_mode = #tpu.pipeline_mode<synchronous>, transform_indices = @transform_3, window_bounds = array<i64: 4, 8>}, {pipeline_mode = #tpu.pipeline_mode<synchronous>, transform_indices = @transform_4, window_bounds = array<i64: 1, 8>}, {pipeline_mode = #tpu.pipeline_mode<synchronous>, transform_indices = @transform_5, window_bounds = array<i64: 1, 8>}, {pipeline_mode = #tpu.pipeline_mode<synchronous>, transform_indices = @transform_6, window_bounds = array<i64: 9, 8>}, {pipeline_mode = #tpu.pipeline_mode<synchronous>, transform_indices = @transform_7, window_bounds = array<i64: 8, 8>}, {pipeline_mode = #tpu.pipeline_mode<synchronous>, transform_indices = @transform_8, window_bounds = array<i64: 1, 8>}, {pipeline_mode = #tpu.pipeline_mode<synchronous>, transform_indices = @transform_9, window_bounds = array<i64: 1, 8>}, {transform_indices = @transform_10, window_bounds = array<i64: 1, 8, 8, 8>}]} {
    %c8_i32 = arith.constant 8 : i32
    %0 = arith.muli %arg1, %c8_i32 : i32
    %c0 = arith.constant 0 : index
    %c0_0 = arith.constant 0 : index
    %c0_1 = arith.constant 0 : index
    %c0_2 = arith.constant 0 : index
    %c0_3 = arith.constant 0 : index
    %1 = vector.load %arg2[%c0, %c0_0, %c0_1, %c0_2, %c0_3] : memref<1x4x8x17x4xf32, #tpu.memory_space<vmem>>, vector<1x4x8x17x4xf32>
    %2 = vector.shape_cast %1 : vector<1x4x8x17x4xf32> to vector<4x8x17x4xf32>
    %c0_4 = arith.constant 0 : index
    %c0_5 = arith.constant 0 : index
    %c0_6 = arith.constant 0 : index
    %c0_7 = arith.constant 0 : index
    %c0_8 = arith.constant 0 : index
    %3 = vector.load %arg3[%c0_4, %c0_5, %c0_6, %c0_7, %c0_8] : memref<1x4x4x17x4xf32, #tpu.memory_space<vmem>>, vector<1x4x4x17x4xf32>
    %4 = vector.shape_cast %3 : vector<1x4x4x17x4xf32> to vector<4x4x17x4xf32>
    %5 = tpu.concatenate %2, %4 in 1 : vector<4x8x17x4xf32>, vector<4x4x17x4xf32> -> vector<4x12x17x4xf32>
    %c0_9 = arith.constant 0 : index
    %c0_10 = arith.constant 0 : index
    %6 = vector.load %arg4[%c0_9, %c0_10] : memref<9x4xf32, #tpu.memory_space<vmem>>, vector<9x4xf32>
    %cst = arith.constant 0.000000e+00 : f32
    %7 = vector.broadcast %cst : f32 to vector<10x16x4xf32>
    %8 = vector.extract_strided_slice %5 {offsets = [0, 0, 0, 0], sizes = [1, 10, 16, 4], strides = [1, 1, 1, 1]} : vector<4x12x17x4xf32> to vector<1x10x16x4xf32>
    %9 = vector.shape_cast %8 : vector<1x10x16x4xf32> to vector<10x16x4xf32>
    %10 = vector.extract_strided_slice %6 {offsets = [0, 0], sizes = [1, 4], strides = [1, 1]} : vector<9x4xf32> to vector<1x4xf32>
    %11 = vector.shape_cast %10 : vector<1x4xf32> to vector<1x1x4xf32>
    %12 = vector.broadcast %11 : vector<1x1x4xf32> to vector<10x16x4xf32>
    %13 = arith.mulf %9, %12 : vector<10x16x4xf32>
    %14 = arith.addf %7, %13 : vector<10x16x4xf32>
    %15 = vector.extract_strided_slice %5 {offsets = [1, 0, 0, 0], sizes = [1, 10, 16, 4], strides = [1, 1, 1, 1]} : vector<4x12x17x4xf32> to vector<1x10x16x4xf32>
    %16 = vector.shape_cast %15 : vector<1x10x16x4xf32> to vector<10x16x4xf32>
    %17 = vector.extract_strided_slice %6 {offsets = [1, 0], sizes = [1, 4], strides = [1, 1]} : vector<9x4xf32> to vector<1x4xf32>
    %18 = vector.shape_cast %17 : vector<1x4xf32> to vector<1x1x4xf32>
    %19 = vector.broadcast %18 : vector<1x1x4xf32> to vector<10x16x4xf32>
    %20 = arith.mulf %16, %19 : vector<10x16x4xf32>
    %21 = arith.addf %14, %20 : vector<10x16x4xf32>
    %22 = vector.extract_strided_slice %5 {offsets = [0, 0, 1, 0], sizes = [1, 10, 16, 4], strides = [1, 1, 1, 1]} : vector<4x12x17x4xf32> to vector<1x10x16x4xf32>
    %23 = vector.shape_cast %22 : vector<1x10x16x4xf32> to vector<10x16x4xf32>
    %24 = vector.extract_strided_slice %6 {offsets = [2, 0], sizes = [1, 4], strides = [1, 1]} : vector<9x4xf32> to vector<1x4xf32>
    %25 = vector.shape_cast %24 : vector<1x4xf32> to vector<1x1x4xf32>
    %26 = vector.broadcast %25 : vector<1x1x4xf32> to vector<10x16x4xf32>
    %27 = arith.mulf %23, %26 : vector<10x16x4xf32>
    %28 = arith.addf %21, %27 : vector<10x16x4xf32>
    %29 = vector.extract_strided_slice %5 {offsets = [2, 0, 0, 0], sizes = [1, 10, 16, 4], strides = [1, 1, 1, 1]} : vector<4x12x17x4xf32> to vector<1x10x16x4xf32>
    %30 = vector.shape_cast %29 : vector<1x10x16x4xf32> to vector<10x16x4xf32>
    %31 = vector.extract_strided_slice %6 {offsets = [3, 0], sizes = [1, 4], strides = [1, 1]} : vector<9x4xf32> to vector<1x4xf32>
    %32 = vector.shape_cast %31 : vector<1x4xf32> to vector<1x1x4xf32>
    %33 = vector.broadcast %32 : vector<1x1x4xf32> to vector<10x16x4xf32>
    %34 = arith.mulf %30, %33 : vector<10x16x4xf32>
    %35 = arith.addf %28, %34 : vector<10x16x4xf32>
    %36 = vector.extract_strided_slice %5 {offsets = [3, 0, 0, 0], sizes = [1, 10, 16, 4], strides = [1, 1, 1, 1]} : vector<4x12x17x4xf32> to vector<1x10x16x4xf32>
    %37 = vector.shape_cast %36 : vector<1x10x16x4xf32> to vector<10x16x4xf32>
    %38 = vector.extract_strided_slice %6 {offsets = [4, 0], sizes = [1, 4], strides = [1, 1]} : vector<9x4xf32> to vector<1x4xf32>
    %39 = vector.shape_cast %38 : vector<1x4xf32> to vector<1x1x4xf32>
    %40 = vector.broadcast %39 : vector<1x1x4xf32> to vector<10x16x4xf32>
    %41 = arith.mulf %37, %40 : vector<10x16x4xf32>
    %42 = arith.addf %35, %41 : vector<10x16x4xf32>
    %43 = vector.extract_strided_slice %5 {offsets = [2, 0, 1, 0], sizes = [1, 10, 16, 4], strides = [1, 1, 1, 1]} : vector<4x12x17x4xf32> to vector<1x10x16x4xf32>
    %44 = vector.shape_cast %43 : vector<1x10x16x4xf32> to vector<10x16x4xf32>
    %45 = vector.extract_strided_slice %6 {offsets = [5, 0], sizes = [1, 4], strides = [1, 1]} : vector<9x4xf32> to vector<1x4xf32>
    %46 = vector.shape_cast %45 : vector<1x4xf32> to vector<1x1x4xf32>
    %47 = vector.broadcast %46 : vector<1x1x4xf32> to vector<10x16x4xf32>
    %48 = arith.mulf %44, %47 : vector<10x16x4xf32>
    %49 = arith.addf %42, %48 : vector<10x16x4xf32>
    %50 = vector.extract_strided_slice %5 {offsets = [0, 1, 0, 0], sizes = [1, 10, 16, 4], strides = [1, 1, 1, 1]} : vector<4x12x17x4xf32> to vector<1x10x16x4xf32>
    %51 = vector.shape_cast %50 : vector<1x10x16x4xf32> to vector<10x16x4xf32>
    %52 = vector.extract_strided_slice %6 {offsets = [6, 0], sizes = [1, 4], strides = [1, 1]} : vector<9x4xf32> to vector<1x4xf32>
    %53 = vector.shape_cast %52 : vector<1x4xf32> to vector<1x1x4xf32>
    %54 = vector.broadcast %53 : vector<1x1x4xf32> to vector<10x16x4xf32>
    %55 = arith.mulf %51, %54 : vector<10x16x4xf32>
    %56 = arith.addf %49, %55 : vector<10x16x4xf32>
    %57 = vector.extract_strided_slice %5 {offsets = [1, 1, 0, 0], sizes = [1, 10, 16, 4], strides = [1, 1, 1, 1]} : vector<4x12x17x4xf32> to vector<1x10x16x4xf32>
    %58 = vector.shape_cast %57 : vector<1x10x16x4xf32> to vector<10x16x4xf32>
    %59 = vector.extract_strided_slice %6 {offsets = [7, 0], sizes = [1, 4], strides = [1, 1]} : vector<9x4xf32> to vector<1x4xf32>
    %60 = vector.shape_cast %59 : vector<1x4xf32> to vector<1x1x4xf32>
    %61 = vector.broadcast %60 : vector<1x1x4xf32> to vector<10x16x4xf32>
    %62 = arith.mulf %58, %61 : vector<10x16x4xf32>
    %63 = arith.addf %56, %62 : vector<10x16x4xf32>
    %64 = vector.extract_strided_slice %5 {offsets = [0, 1, 1, 0], sizes = [1, 10, 16, 4], strides = [1, 1, 1, 1]} : vector<4x12x17x4xf32> to vector<1x10x16x4xf32>
    %65 = vector.shape_cast %64 : vector<1x10x16x4xf32> to vector<10x16x4xf32>
    %66 = vector.extract_strided_slice %6 {offsets = [8, 0], sizes = [1, 4], strides = [1, 1]} : vector<9x4xf32> to vector<1x4xf32>
    %67 = vector.shape_cast %66 : vector<1x4xf32> to vector<1x1x4xf32>
    %68 = vector.broadcast %67 : vector<1x1x4xf32> to vector<10x16x4xf32>
    %69 = arith.mulf %65, %68 : vector<10x16x4xf32>
    %70 = arith.addf %63, %69 : vector<10x16x4xf32>
    %71 = vector.shape_cast %70 : vector<10x16x4xf32> to vector<160x4xf32>
    %72 = arith.truncf %71 : vector<160x4xf32> to vector<160x4xbf16>
    %c0_11 = arith.constant 0 : index
    %c0_12 = arith.constant 0 : index
    %73 = vector.load %arg5[%c0_11, %c0_12] : memref<4x8xbf16, #tpu.memory_space<vmem>>, vector<4x8xbf16>
    %cst_13 = arith.constant dense<0.000000e+00> : vector<160x8xf32>
    %74 = tpu.matmul %72, %73, %cst_13 {dimension_numbers = #tpu.dot_dimension_numbers<[1], [0], [0], [1], [0, 0, 1, 1], [], []>} : vector<160x4xbf16>, vector<4x8xbf16>, vector<160x8xf32> -> vector<160x8xf32>
    %c0_14 = arith.constant 0 : index
    %c0_15 = arith.constant 0 : index
    %75 = vector.load %arg6[%c0_14, %c0_15] : memref<1x8xf32, #tpu.memory_space<vmem>>, vector<1x8xf32>
    %76 = vector.broadcast %75 : vector<1x8xf32> to vector<160x8xf32>
    %77 = arith.mulf %74, %76 : vector<160x8xf32>
    %c0_16 = arith.constant 0 : index
    %c0_17 = arith.constant 0 : index
    %78 = vector.load %arg7[%c0_16, %c0_17] : memref<1x8xf32, #tpu.memory_space<vmem>>, vector<1x8xf32>
    %79 = vector.broadcast %78 : vector<1x8xf32> to vector<160x8xf32>
    %80 = arith.addf %77, %79 : vector<160x8xf32>
    %cst_18 = arith.constant 0.000000e+00 : f32
    %81 = vector.broadcast %cst_18 : f32 to vector<160x8xf32>
    %82 = arith.maximumf %80, %81 : vector<160x8xf32>
    %83 = vector.shape_cast %82 : vector<160x8xf32> to vector<10x16x8xf32>
    %c1_i32 = arith.constant 1 : i32
    %84 = arith.subi %0, %c1_i32 : i32
    %85 = tpu.iota {dimensions = array<i32: 0>} : vector<10x16x8xi32>
    %86 = vector.broadcast %84 : i32 to vector<10x16x8xi32>
    %87 = arith.addi %86, %85 : vector<10x16x8xi32>
    %88 = tpu.iota {dimensions = array<i32: 1>} : vector<10x16x8xi32>
    %c-1_i32 = arith.constant -1 : i32
    %89 = vector.broadcast %c-1_i32 : i32 to vector<10x16x8xi32>
    %90 = arith.addi %89, %88 : vector<10x16x8xi32>
    %c0_i32 = arith.constant 0 : i32
    %91 = vector.broadcast %c0_i32 : i32 to vector<10x16x8xi32>
    %92 = arith.cmpi sge, %87, %91 : vector<10x16x8xi32>
    %c8_i32_19 = arith.constant 8 : i32
    %93 = vector.broadcast %c8_i32_19 : i32 to vector<10x16x8xi32>
    %94 = arith.cmpi slt, %87, %93 : vector<10x16x8xi32>
    %95 = arith.andi %92, %94 : vector<10x16x8xi1>
    %c0_i32_20 = arith.constant 0 : i32
    %96 = vector.broadcast %c0_i32_20 : i32 to vector<10x16x8xi32>
    %97 = arith.cmpi sge, %90, %96 : vector<10x16x8xi32>
    %98 = arith.andi %95, %97 : vector<10x16x8xi1>
    %c8_i32_21 = arith.constant 8 : i32
    %99 = vector.broadcast %c8_i32_21 : i32 to vector<10x16x8xi32>
    %100 = arith.cmpi slt, %90, %99 : vector<10x16x8xi32>
    %101 = arith.andi %98, %100 : vector<10x16x8xi1>
    %cst_22 = arith.constant 0.000000e+00 : f32
    %102 = vector.broadcast %cst_22 : f32 to vector<10x16x8xf32>
    %103 = arith.select %101, %83, %102 : vector<10x16x8xi1>, vector<10x16x8xf32>
    %c0_23 = arith.constant 0 : index
    %c0_24 = arith.constant 0 : index
    %104 = vector.load %arg8[%c0_23, %c0_24] : memref<9x8xf32, #tpu.memory_space<vmem>>, vector<9x8xf32>
    %cst_25 = arith.constant 0.000000e+00 : f32
    %105 = vector.broadcast %cst_25 : f32 to vector<8x8x8xf32>
    %106 = vector.extract_strided_slice %103 {offsets = [0, 0, 0], sizes = [8, 8, 8], strides = [1, 1, 1]} : vector<10x16x8xf32> to vector<8x8x8xf32>
    %107 = vector.extract_strided_slice %104 {offsets = [0, 0], sizes = [1, 8], strides = [1, 1]} : vector<9x8xf32> to vector<1x8xf32>
    %108 = vector.shape_cast %107 : vector<1x8xf32> to vector<1x1x8xf32>
    %109 = vector.broadcast %108 : vector<1x1x8xf32> to vector<8x8x8xf32>
    %110 = arith.mulf %106, %109 : vector<8x8x8xf32>
    %111 = arith.addf %105, %110 : vector<8x8x8xf32>
    %112 = vector.extract_strided_slice %103 {offsets = [0, 1, 0], sizes = [8, 8, 8], strides = [1, 1, 1]} : vector<10x16x8xf32> to vector<8x8x8xf32>
    %113 = vector.extract_strided_slice %104 {offsets = [1, 0], sizes = [1, 8], strides = [1, 1]} : vector<9x8xf32> to vector<1x8xf32>
    %114 = vector.shape_cast %113 : vector<1x8xf32> to vector<1x1x8xf32>
    %115 = vector.broadcast %114 : vector<1x1x8xf32> to vector<8x8x8xf32>
    %116 = arith.mulf %112, %115 : vector<8x8x8xf32>
    %117 = arith.addf %111, %116 : vector<8x8x8xf32>
    %118 = vector.extract_strided_slice %103 {offsets = [0, 2, 0], sizes = [8, 8, 8], strides = [1, 1, 1]} : vector<10x16x8xf32> to vector<8x8x8xf32>
    %119 = vector.extract_strided_slice %104 {offsets = [2, 0], sizes = [1, 8], strides = [1, 1]} : vector<9x8xf32> to vector<1x8xf32>
    %120 = vector.shape_cast %119 : vector<1x8xf32> to vector<1x1x8xf32>
    %121 = vector.broadcast %120 : vector<1x1x8xf32> to vector<8x8x8xf32>
    %122 = arith.mulf %118, %121 : vector<8x8x8xf32>
    %123 = arith.addf %117, %122 : vector<8x8x8xf32>
    %124 = vector.extract_strided_slice %103 {offsets = [1, 0, 0], sizes = [8, 8, 8], strides = [1, 1, 1]} : vector<10x16x8xf32> to vector<8x8x8xf32>
    %125 = vector.extract_strided_slice %104 {offsets = [3, 0], sizes = [1, 8], strides = [1, 1]} : vector<9x8xf32> to vector<1x8xf32>
    %126 = vector.shape_cast %125 : vector<1x8xf32> to vector<1x1x8xf32>
    %127 = vector.broadcast %126 : vector<1x1x8xf32> to vector<8x8x8xf32>
    %128 = arith.mulf %124, %127 : vector<8x8x8xf32>
    %129 = arith.addf %123, %128 : vector<8x8x8xf32>
    %130 = vector.extract_strided_slice %103 {offsets = [1, 1, 0], sizes = [8, 8, 8], strides = [1, 1, 1]} : vector<10x16x8xf32> to vector<8x8x8xf32>
    %131 = vector.extract_strided_slice %104 {offsets = [4, 0], sizes = [1, 8], strides = [1, 1]} : vector<9x8xf32> to vector<1x8xf32>
    %132 = vector.shape_cast %131 : vector<1x8xf32> to vector<1x1x8xf32>
    %133 = vector.broadcast %132 : vector<1x1x8xf32> to vector<8x8x8xf32>
    %134 = arith.mulf %130, %133 : vector<8x8x8xf32>
    %135 = arith.addf %129, %134 : vector<8x8x8xf32>
    %136 = vector.extract_strided_slice %103 {offsets = [1, 2, 0], sizes = [8, 8, 8], strides = [1, 1, 1]} : vector<10x16x8xf32> to vector<8x8x8xf32>
    %137 = vector.extract_strided_slice %104 {offsets = [5, 0], sizes = [1, 8], strides = [1, 1]} : vector<9x8xf32> to vector<1x8xf32>
    %138 = vector.shape_cast %137 : vector<1x8xf32> to vector<1x1x8xf32>
    %139 = vector.broadcast %138 : vector<1x1x8xf32> to vector<8x8x8xf32>
    %140 = arith.mulf %136, %139 : vector<8x8x8xf32>
    %141 = arith.addf %135, %140 : vector<8x8x8xf32>
    %142 = vector.extract_strided_slice %103 {offsets = [2, 0, 0], sizes = [8, 8, 8], strides = [1, 1, 1]} : vector<10x16x8xf32> to vector<8x8x8xf32>
    %143 = vector.extract_strided_slice %104 {offsets = [6, 0], sizes = [1, 8], strides = [1, 1]} : vector<9x8xf32> to vector<1x8xf32>
    %144 = vector.shape_cast %143 : vector<1x8xf32> to vector<1x1x8xf32>
    %145 = vector.broadcast %144 : vector<1x1x8xf32> to vector<8x8x8xf32>
    %146 = arith.mulf %142, %145 : vector<8x8x8xf32>
    %147 = arith.addf %141, %146 : vector<8x8x8xf32>
    %148 = vector.extract_strided_slice %103 {offsets = [2, 1, 0], sizes = [8, 8, 8], strides = [1, 1, 1]} : vector<10x16x8xf32> to vector<8x8x8xf32>
    %149 = vector.extract_strided_slice %104 {offsets = [7, 0], sizes = [1, 8], strides = [1, 1]} : vector<9x8xf32> to vector<1x8xf32>
    %150 = vector.shape_cast %149 : vector<1x8xf32> to vector<1x1x8xf32>
    %151 = vector.broadcast %150 : vector<1x1x8xf32> to vector<8x8x8xf32>
    %152 = arith.mulf %148, %151 : vector<8x8x8xf32>
    %153 = arith.addf %147, %152 : vector<8x8x8xf32>
    %154 = vector.extract_strided_slice %103 {offsets = [2, 2, 0], sizes = [8, 8, 8], strides = [1, 1, 1]} : vector<10x16x8xf32> to vector<8x8x8xf32>
    %155 = vector.extract_strided_slice %104 {offsets = [8, 0], sizes = [1, 8], strides = [1, 1]} : vector<9x8xf32> to vector<1x8xf32>
    %156 = vector.shape_cast %155 : vector<1x8xf32> to vector<1x1x8xf32>
    %157 = vector.broadcast %156 : vector<1x1x8xf32> to vector<8x8x8xf32>
    %158 = arith.mulf %154, %157 : vector<8x8x8xf32>
    %159 = arith.addf %153, %158 : vector<8x8x8xf32>
    %160 = vector.shape_cast %159 : vector<8x8x8xf32> to vector<64x8xf32>
    %161 = arith.truncf %160 : vector<64x8xf32> to vector<64x8xbf16>
    %c0_26 = arith.constant 0 : index
    %c0_27 = arith.constant 0 : index
    %162 = vector.load %arg9[%c0_26, %c0_27] : memref<8x8xbf16, #tpu.memory_space<vmem>>, vector<8x8xbf16>
    %cst_28 = arith.constant dense<0.000000e+00> : vector<64x8xf32>
    %163 = tpu.matmul %161, %162, %cst_28 {dimension_numbers = #tpu.dot_dimension_numbers<[1], [0], [0], [1], [0, 0, 1, 1], [], []>} : vector<64x8xbf16>, vector<8x8xbf16>, vector<64x8xf32> -> vector<64x8xf32>
    %c0_29 = arith.constant 0 : index
    %c0_30 = arith.constant 0 : index
    %164 = vector.load %arg10[%c0_29, %c0_30] : memref<1x8xf32, #tpu.memory_space<vmem>>, vector<1x8xf32>
    %165 = vector.broadcast %164 : vector<1x8xf32> to vector<64x8xf32>
    %166 = arith.mulf %163, %165 : vector<64x8xf32>
    %c0_31 = arith.constant 0 : index
    %c0_32 = arith.constant 0 : index
    %167 = vector.load %arg11[%c0_31, %c0_32] : memref<1x8xf32, #tpu.memory_space<vmem>>, vector<1x8xf32>
    %168 = vector.broadcast %167 : vector<1x8xf32> to vector<64x8xf32>
    %169 = arith.addf %166, %168 : vector<64x8xf32>
    %cst_33 = arith.constant 0.000000e+00 : f32
    %170 = vector.broadcast %cst_33 : f32 to vector<64x8xf32>
    %171 = arith.maximumf %169, %170 : vector<64x8xf32>
    %172 = vector.shape_cast %171 : vector<64x8xf32> to vector<8x8x8xf32>
    %c0_34 = arith.constant 0 : index
    %c0_35 = arith.constant 0 : index
    %c0_36 = arith.constant 0 : index
    %c0_37 = arith.constant 0 : index
    %173 = vector.load %arg12[%c0_34, %c0_35, %c0_36, %c0_37] : memref<1x8x8x8xf32, #tpu.memory_space<vmem>>, vector<1x8x8x8xf32>
    %174 = vector.shape_cast %173 : vector<1x8x8x8xf32> to vector<8x8x8xf32>
    %175 = vector.shape_cast %172 : vector<8x8x8xf32> to vector<1x8x8x8xf32>
    tpu.vector_store %arg12[%c0_34, %c0_35, %c0_36, %c0_37], %175 {strides = array<i32>} : memref<1x8x8x8xf32, #tpu.memory_space<vmem>>, vector<1x8x8x8xf32>,
    return
  }
  func.func @transform_0(%arg0: i32, %arg1: i32) -> (i32, i32, i32, i32, i32) {
    %c0_i32 = arith.constant 0 : i32
    %c0_i32_0 = arith.constant 0 : i32
    %c0_i32_1 = arith.constant 0 : i32
    %c0_i32_2 = arith.constant 0 : i32
    return %arg0, %c0_i32, %arg1, %c0_i32_0, %c0_i32_1 : i32, i32, i32, i32, i32
  }
  func.func @transform_1(%arg0: i32, %arg1: i32) -> (i32, i32, i32, i32, i32) {
    %c1_i32 = arith.constant 1 : i32
    %0 = arith.addi %arg1, %c1_i32 : i32
    %c2_i32 = arith.constant 2 : i32
    %1 = arith.muli %0, %c2_i32 : i32
    %c0_i32 = arith.constant 0 : i32
    %c0_i32_0 = arith.constant 0 : i32
    %c0_i32_1 = arith.constant 0 : i32
    %c0_i32_2 = arith.constant 0 : i32
    return %arg0, %c0_i32, %1, %c0_i32_0, %c0_i32_1 : i32, i32, i32, i32, i32
  }
  func.func @transform_2(%arg0: i32, %arg1: i32) -> (i32, i32) {
    %c0_i32 = arith.constant 0 : i32
    %c0_i32_0 = arith.constant 0 : i32
    %c0_i32_1 = arith.constant 0 : i32
    return %c0_i32, %c0_i32_0 : i32, i32
  }
  func.func @transform_3(%arg0: i32, %arg1: i32) -> (i32, i32) {
    %c0_i32 = arith.constant 0 : i32
    %c0_i32_0 = arith.constant 0 : i32
    %c0_i32_1 = arith.constant 0 : i32
    return %c0_i32, %c0_i32_0 : i32, i32
  }
  func.func @transform_4(%arg0: i32, %arg1: i32) -> (i32, i32) {
    %c0_i32 = arith.constant 0 : i32
    %c0_i32_0 = arith.constant 0 : i32
    %c0_i32_1 = arith.constant 0 : i32
    return %c0_i32, %c0_i32_0 : i32, i32
  }
  func.func @transform_5(%arg0: i32, %arg1: i32) -> (i32, i32) {
    %c0_i32 = arith.constant 0 : i32
    %c0_i32_0 = arith.constant 0 : i32
    %c0_i32_1 = arith.constant 0 : i32
    return %c0_i32, %c0_i32_0 : i32, i32
  }
  func.func @transform_6(%arg0: i32, %arg1: i32) -> (i32, i32) {
    %c0_i32 = arith.constant 0 : i32
    %c0_i32_0 = arith.constant 0 : i32
    %c0_i32_1 = arith.constant 0 : i32
    return %c0_i32, %c0_i32_0 : i32, i32
  }
  func.func @transform_7(%arg0: i32, %arg1: i32) -> (i32, i32) {
    %c0_i32 = arith.constant 0 : i32
    %c0_i32_0 = arith.constant 0 : i32
    %c0_i32_1 = arith.constant 0 : i32
    return %c0_i32, %c0_i32_0 : i32, i32
  }
  func.func @transform_8(%arg0: i32, %arg1: i32) -> (i32, i32) {
    %c0_i32 = arith.constant 0 : i32
    %c0_i32_0 = arith.constant 0 : i32
    %c0_i32_1 = arith.constant 0 : i32
    return %c0_i32, %c0_i32_0 : i32, i32
  }
  func.func @transform_9(%arg0: i32, %arg1: i32) -> (i32, i32) {
    %c0_i32 = arith.constant 0 : i32
    %c0_i32_0 = arith.constant 0 : i32
    %c0_i32_1 = arith.constant 0 : i32
    return %c0_i32, %c0_i32_0 : i32, i32
  }
  func.func @transform_10(%arg0: i32, %arg1: i32) -> (i32, i32, i32, i32) {
    %c0_i32 = arith.constant 0 : i32
    %c0_i32_0 = arith.constant 0 : i32
    %c0_i32_1 = arith.constant 0 : i32
    return %arg0, %arg1, %c0_i32, %c0_i32_0 : i32, i32, i32, i32
  }
}

</mosaic_0001>

<bundles_post_ra>
// kernel: down_sampling_forward.1
= control target key start
LH: loop header
LB: loop body
LE: loop exit
PB: predicated region body
PF: predicated region fallthrough
CT: control target
= control target key end

     0   :  { %s3278_s13 = smov 0   ;;  %s3280_s14 = smov 0   ;;  %s4722_s0 = inlined_call_operand.vmem [shape: f32[2,4,16,17,4], index: 0, kind: input, shape index: {}, may-alias: {0,1}]   ;;  %s4723_s1 = inlined_call_operand.vmem [shape: f32[2,4,16,17,4], index: 1, kind: input, shape index: {}, may-alias: {0,1}]   ;;  %s4724_s2 = inlined_call_operand.vmem [shape: f32[9,4], index: 2, kind: input, shape index: {}]   ;;  %s4725_s3 = inlined_call_operand.vmem [shape: bf16[4,8], index: 3, kind: input, shape index: {}]   ;;  %s4726_s4 = inlined_call_operand.vmem [shape: f32[1,8], index: 4, kind: input, shape index: {}]   ;;  %s4727_s5 = inlined_call_operand.vmem [shape: f32[1,8], index: 5, kind: input, shape index: {}]   ;;  %s4728_s6 = inlined_call_operand.vmem [shape: f32[9,8], index: 6, kind: input, shape index: {}]   ;;  %s4729_s7 = inlined_call_operand.vmem [shape: bf16[8,8], index: 7, kind: input, shape index: {}]   ;;  %s4730_s8 = inlined_call_operand.vmem [shape: f32[1,8], index: 8, kind: input, shape index: {}]   ;;  %s4731_s9 = inlined_call_operand.vmem [shape: f32[1,8], index: 9, kind: input, shape index: {}]   ;;  %s4732_s10 = inlined_call_operand.vmem [shape: f32[2,8,8,8], index: 10, kind: output, shape index: {}]  }
   0x1   :  { %s3282_s15 = smov 0   ;;  %s3284_s16 = smov 0  }
   0x2   :  { %s3286_s17 = smov 0  }
   0x3 LB: > { %s32_s18 = sadd.s32 1, %s3217_s16  ;;  %p48_p1 = scmp.ne.s32.totalorder %s3209_s14, %s3205_s13  ;;  %s3221_s17 = sphi %s3286_s17, %s20_s17   ;;  %s3217_s16 = sphi %s3284_s16, %s4737_s16   ;;  %s3213_s15 = sphi %s3282_s15, %s4736_s15   ;;  %s3209_s14 = sphi %s3280_s14, %s4735_s14   ;;  %s3205_s13 = sphi %s3278_s13, %s4734_s13  }
   0x4   : > { %p34_p0 = scmp.ge.s32.totalorder %s32_s18, 2  ;;  %p49_p2 = scmp.eq.s32.totalorder %s3221_s17, 0 }
   0x5   : > { %s41_s21 = sadd.s32 1, %s3209_s14  ;;  %p3007_p5 = scmp.ge.s32.totalorder %s3221_s17, 2 }
   0x6   : > { %s4739_s18 = smov (%p34_p0, %s32_s18), 0  ;;  %p3309_p3 = por %p49_p2, %p48_p1 }
   0x7   : > { %s36_s20 = ssub.s32 %s3217_s16, %s4739_s18  ;;  %326 = sbr.rel (%p3007_p5) target bundleno = 96 (0x60), region = 48 }
   0x8   : > { %p39_p4 = scmp.eq.s32.totalorder %s36_s20, 0 }
   0xa   : > { %s3317_s22 = scalar_select %p39_p4, %s3209_s14, %s41_s21  }
   0xe   : > { %329 = sbr.rel (!%p3309_p3) target bundleno = 67 (0x43), region = 52  ;;  %s331_s23 = sand.u32 (%p3309_p3), 1, %s3209_s14  }
   0xf   : > { %s3138_s24 = smul.u32 (%p3309_p3), 1536, %s3217_s16 }
  0x10   : > { %s3137_s25 = smul.u32 (%p3309_p3), 768, %s331_s23 }
  0x11   : > { %s3327_s28 = scalar_lea.vmem (%p3309_p3), %s4722_s0, %s3138_s24 }
  0x12   : > { %v557_v0 = vld [vmem:[%s3327_s28] sm:$0xff] (%p3309_p3)  ;;  %v559_v1 = vld [vmem:[%s3327_s28 + $0x8] sm:$0xff] (%p3309_p3)  ;;  %v561_v2 = vld [vmem:[%s3327_s28 + $0x10] sm:$0xff] (%p3309_p3)  ;;  %s3332_s29 = scalar_lea.vmem (%p3309_p3), [#allocation2], %s3137_s25 }
  0x13   : > { %558 = vst [vmem:[%s3332_s29] sm:$0xff] (%p3309_p3), %v557_v0  ;;  %560 = vst [vmem:[%s3332_s29 + $0x8] sm:$0xff] (%p3309_p3), %v559_v1  ;;  %v563_v3 = vld [vmem:[%s3327_s28 + $0x18] sm:$0xff] (%p3309_p3)  ;;  %v565_v4 = vld [vmem:[%s3327_s28 + $0x20] sm:$0xff] (%p3309_p3) }
  0x14   : > { %562 = vst [vmem:[%s3332_s29 + $0x10] sm:$0xff] (%p3309_p3), %v561_v2  ;;  %v567_v5 = vld [vmem:[%s3327_s28 + $0x28] sm:$0xff] (%p3309_p3)  ;;  %564 = vst [vmem:[%s3332_s29 + $0x18] sm:$0xff] (%p3309_p3), %v563_v3  ;;  %v569_v6 = vld [vmem:[%s3327_s28 + $0x30] sm:$0xff] (%p3309_p3) }
  0x15   : > { %566 = vst [vmem:[%s3332_s29 + $0x20] sm:$0xff] %v565_v4  ;;  %568 = vst [vmem:[%s3332_s29 + $0x28] sm:$0xff] %v567_v5  ;;  %v571_v7 = vld [vmem:[%s3327_s28 + $0x38] sm:$0xff]  ;;  %v573_v8 = vld [vmem:[%s3327_s28 + $0x40] sm:$0xff] }
  0x16   : > { %570 = vst [vmem:[%s3332_s29 + $0x30] sm:$0xff] %v569_v6  ;;  %572 = vst [vmem:[%s3332_s29 + $0x38] sm:$0xff] %v571_v7  ;;  %v575_v9 = vld [vmem:[%s3327_s28 + $0x48] sm:$0xff]  ;;  %v577_v10 = vld [vmem:[%s3327_s28 + $0x50] sm:$0xff] }
  0x17   : > { %574 = vst [vmem:[%s3332_s29 + $0x40] sm:$0xff] %v573_v8  ;;  %v579_v11 = vld [vmem:[%s3327_s28 + $0x58] sm:$0xff]  ;;  %576 = vst [vmem:[%s3332_s29 + $0x48] sm:$0xff] %v575_v9  ;;  %v581_v12 = vld [vmem:[%s3327_s28 + $0x60] sm:$0xff] }
  0x18   : > { %578 = vst [vmem:[%s3332_s29 + $0x50] sm:$0xff] %v577_v10  ;;  %580 = vst [vmem:[%s3332_s29 + $0x58] sm:$0xff] %v579_v11  ;;  %v583_v13 = vld [vmem:[%s3327_s28 + $0x68] sm:$0xff]  ;;  %v585_v14 = vld [vmem:[%s3327_s28 + $0x70] sm:$0xff] }
  0x19   : > { %582 = vst [vmem:[%s3332_s29 + $0x60] sm:$0xff] %v581_v12  ;;  %584 = vst [vmem:[%s3332_s29 + $0x68] sm:$0xff] %v583_v13  ;;  %v587_v15 = vld [vmem:[%s3327_s28 + $0x78] sm:$0xff]  ;;  %v589_v16 = vld [vmem:[%s3327_s28 + $0x80] sm:$0xff] }
  0x1a   : > { %586 = vst [vmem:[%s3332_s29 + $0x70] sm:$0xff] %v585_v14  ;;  %v591_v17 = vld [vmem:[%s3327_s28 + $0x88] sm:$0xff]  ;;  %588 = vst [vmem:[%s3332_s29 + $0x78] sm:$0xff] %v587_v15  ;;  %v593_v18 = vld [vmem:[%s3327_s28 + $0x90] sm:$0xff] }
  0x1b   : > { %590 = vst [vmem:[%s3332_s29 + $0x80] sm:$0xff] %v589_v16  ;;  %592 = vst [vmem:[%s3332_s29 + $0x88] sm:$0xff] %v591_v17  ;;  %v595_v19 = vld [vmem:[%s3327_s28 + $0x98] sm:$0xff]  ;;  %v597_v20 = vld [vmem:[%s3327_s28 + $0xa0] sm:$0xff] }
  0x1c   : > { %594 = vst [vmem:[%s3332_s29 + $0x90] sm:$0xff] %v593_v18  ;;  %596 = vst [vmem:[%s3332_s29 + $0x98] sm:$0xff] %v595_v19  ;;  %v599_v21 = vld [vmem:[%s3327_s28 + $0xa8] sm:$0xff]  ;;  %v601_v22 = vld [vmem:[%s3327_s28 + $0xb0] sm:$0xff] }
  0x1d   : > { %598 = vst [vmem:[%s3332_s29 + $0xa0] sm:$0xff] %v597_v20  ;;  %v603_v23 = vld [vmem:[%s3327_s28 + $0xb8] sm:$0xff]  ;;  %600 = vst [vmem:[%s3332_s29 + $0xa8] sm:$0xff] %v599_v21  ;;  %v605_v24 = vld [vmem:[%s3327_s28 + $0x180] sm:$0xff] }
  0x1e   : > { %602 = vst [vmem:[%s3332_s29 + $0xb0] sm:$0xff] %v601_v22  ;;  %604 = vst [vmem:[%s3332_s29 + $0xb8] sm:$0xff] %v603_v23  ;;  %v607_v25 = vld [vmem:[%s3327_s28 + $0x188] sm:$0xff]  ;;  %v609_v26 = vld [vmem:[%s3327_s28 + $0x190] sm:$0xff] }
  0x1f   : > { %606 = vst [vmem:[%s3332_s29 + $0xc0] sm:$0xff] %v605_v24  ;;  %608 = vst [vmem:[%s3332_s29 + $0xc8] sm:$0xff] %v607_v25  ;;  %v611_v27 = vld [vmem:[%s3327_s28 + $0x198] sm:$0xff]  ;;  %v613_v28 = vld [vmem:[%s3327_s28 + $0x1a0] sm:$0xff] }
  0x20   : > { %610 = vst [vmem:[%s3332_s29 + $0xd0] sm:$0xff] %v609_v26  ;;  %v615_v29 = vld [vmem:[%s3327_s28 + $0x1a8] sm:$0xff]  ;;  %612 = vst [vmem:[%s3332_s29 + $0xd8] sm:$0xff] %v611_v27  ;;  %v617_v30 = vld [vmem:[%s3327_s28 + $0x1b0] sm:$0xff] }
  0x21   : > { %614 = vst [vmem:[%s3332_s29 + $0xe0] sm:$0xff] %v613_v28  ;;  %616 = vst [vmem:[%s3332_s29 + $0xe8] sm:$0xff] %v615_v29  ;;  %v619_v31 = vld [vmem:[%s3327_s28 + $0x1b8] sm:$0xff]  ;;  %v621_v32 = vld [vmem:[%s3327_s28 + $0x1c0] sm:$0xff] }
  0x22   : > { %618 = vst [vmem:[%s3332_s29 + $0xf0] sm:$0xff] %v617_v30  ;;  %620 = vst [vmem:[%s3332_s29 + $0xf8] sm:$0xff] %v619_v31  ;;  %v623_v33 = vld [vmem:[%s3327_s28 + $0x1c8] sm:$0xff]  ;;  %v625_v34 = vld [vmem:[%s3327_s28 + $0x1d0] sm:$0xff] }
  0x23   : > { %622 = vst [vmem:[%s3332_s29 + $0x100] sm:$0xff] %v621_v32  ;;  %v627_v35 = vld [vmem:[%s3327_s28 + $0x1d8] sm:$0xff]  ;;  %624 = vst [vmem:[%s3332_s29 + $0x108] sm:$0xff] %v623_v33  ;;  %v629_v36 = vld [vmem:[%s3327_s28 + $0x1e0] sm:$0xff] }
  0x24   : > { %626 = vst [vmem:[%s3332_s29 + $0x110] sm:$0xff] %v625_v34  ;;  %628 = vst [vmem:[%s3332_s29 + $0x118] sm:$0xff] %v627_v35  ;;  %v631_v37 = vld [vmem:[%s3327_s28 + $0x1e8] sm:$0xff]  ;;  %v633_v38 = vld [vmem:[%s3327_s28 + $0x1f0] sm:$0xff] }
  0x25   : > { %630 = vst [vmem:[%s3332_s29 + $0x120] sm:$0xff] %v629_v36  ;;  %632 = vst [vmem:[%s3332_s29 + $0x128] sm:$0xff] %v631_v37  ;;  %v635_v39 = vld [vmem:[%s3327_s28 + $0x1f8] sm:$0xff]  ;;  %v637_v40 = vld [vmem:[%s3327_s28 + $0x200] sm:$0xff] }
  0x26   : > { %634 = vst [vmem:[%s3332_s29 + $0x130] sm:$0xff] %v633_v38  ;;  %v639_v41 = vld [vmem:[%s3327_s28 + $0x208] sm:$0xff]  ;;  %636 = vst [vmem:[%s3332_s29 + $0x138] sm:$0xff] %v635_v39  ;;  %v641_v42 = vld [vmem:[%s3327_s28 + $0x210] sm:$0xff] }
  0x27   : > { %638 = vst [vmem:[%s3332_s29 + $0x140] sm:$0xff] %v637_v40  ;;  %640 = vst [vmem:[%s3332_s29 + $0x148] sm:$0xff] %v639_v41  ;;  %v643_v43 = vld [vmem:[%s3327_s28 + $0x218] sm:$0xff]  ;;  %v645_v44 = vld [vmem:[%s3327_s28 + $0x220] sm:$0xff] }
  0x28   : > { %642 = vst [vmem:[%s3332_s29 + $0x150] sm:$0xff] %v641_v42  ;;  %644 = vst [vmem:[%s3332_s29 + $0x158] sm:$0xff] %v643_v43  ;;  %v647_v45 = vld [vmem:[%s3327_s28 + $0x228] sm:$0xff]  ;;  %v649_v46 = vld [vmem:[%s3327_s28 + $0x230] sm:$0xff] }
  0x29   : > { %646 = vst [vmem:[%s3332_s29 + $0x160] sm:$0xff] %v645_v44  ;;  %v651_v47 = vld [vmem:[%s3327_s28 + $0x238] sm:$0xff]  ;;  %648 = vst [vmem:[%s3332_s29 + $0x168] sm:$0xff] %v647_v45  ;;  %v653_v48 = vld [vmem:[%s3327_s28 + $0x300] sm:$0xff] }
  0x2a   : > { %650 = vst [vmem:[%s3332_s29 + $0x170] sm:$0xff] %v649_v46  ;;  %652 = vst [vmem:[%s3332_s29 + $0x178] sm:$0xff] %v651_v47  ;;  %v655_v49 = vld [vmem:[%s3327_s28 + $0x308] sm:$0xff]  ;;  %v657_v50 = vld [vmem:[%s3327_s28 + $0x310] sm:$0xff] }
  0x2b   : > { %654 = vst [vmem:[%s3332_s29 + $0x180] sm:$0xff] %v653_v48  ;;  %656 = vst [vmem:[%s3332_s29 + $0x188] sm:$0xff] %v655_v49  ;;  %v659_v51 = vld [vmem:[%s3327_s28 + $0x318] sm:$0xff]  ;;  %v661_v52 = vld [vmem:[%s3327_s28 + $0x320] sm:$0xff] }
  0x2c   : > { %658 = vst [vmem:[%s3332_s29 + $0x190] sm:$0xff] %v657_v50  ;;  %v663_v53 = vld [vmem:[%s3327_s28 + $0x328] sm:$0xff]  ;;  %660 = vst [vmem:[%s3332_s29 + $0x198] sm:$0xff] %v659_v51  ;;  %v665_v54 = vld [vmem:[%s3327_s28 + $0x330] sm:$0xff] }
  0x2d   : > { %662 = vst [vmem:[%s3332_s29 + $0x1a0] sm:$0xff] %v661_v52  ;;  %664 = vst [vmem:[%s3332_s29 + $0x1a8] sm:$0xff] %v663_v53  ;;  %v667_v55 = vld [vmem:[%s3327_s28 + $0x338] sm:$0xff]  ;;  %v669_v56 = vld [vmem:[%s3327_s28 + $0x340] sm:$0xff] }
  0x2e   : > { %666 = vst [vmem:[%s3332_s29 + $0x1b0] sm:$0xff] %v665_v54  ;;  %668 = vst [vmem:[%s3332_s29 + $0x1b8] sm:$0xff] %v667_v55  ;;  %v671_v57 = vld [vmem:[%s3327_s28 + $0x348] sm:$0xff]  ;;  %v673_v58 = vld [vmem:[%s3327_s28 + $0x350] sm:$0xff] }
  0x2f   : > { %670 = vst [vmem:[%s3332_s29 + $0x1c0] sm:$0xff] %v669_v56  ;;  %v675_v59 = vld [vmem:[%s3327_s28 + $0x358] sm:$0xff]  ;;  %672 = vst [vmem:[%s3332_s29 + $0x1c8] sm:$0xff] %v671_v57  ;;  %v677_v60 = vld [vmem:[%s3327_s28 + $0x360] sm:$0xff] }
  0x30   : > { %674 = vst [vmem:[%s3332_s29 + $0x1d0] sm:$0xff] %v673_v58  ;;  %676 = vst [vmem:[%s3332_s29 + $0x1d8] sm:$0xff] %v675_v59  ;;  %v679_v61 = vld [vmem:[%s3327_s28 + $0x368] sm:$0xff]  ;;  %v681_v62 = vld [vmem:[%s3327_s28 + $0x370] sm:$0xff] }
  0x31   : > { %678 = vst [vmem:[%s3332_s29 + $0x1e0] sm:$0xff] %v677_v60  ;;  %680 = vst [vmem:[%s3332_s29 + $0x1e8] sm:$0xff] %v679_v61  ;;  %v683_v63 = vld [vmem:[%s3327_s28 + $0x378] sm:$0xff]  ;;  %v685_v0 = vld [vmem:[%s3327_s28 + $0x380] sm:$0xff] }
  0x32   : > { %682 = vst [vmem:[%s3332_s29 + $0x1f0] sm:$0xff] %v681_v62  ;;  %v687_v1 = vld [vmem:[%s3327_s28 + $0x388] sm:$0xff]  ;;  %684 = vst [vmem:[%s3332_s29 + $0x1f8] sm:$0xff] %v683_v63  ;;  %v689_v2 = vld [vmem:[%s3327_s28 + $0x390] sm:$0xff] }
  0x33   : > { %686 = vst [vmem:[%s3332_s29 + $0x200] sm:$0xff] %v685_v0  ;;  %688 = vst [vmem:[%s3332_s29 + $0x208] sm:$0xff] %v687_v1  ;;  %v691_v3 = vld [vmem:[%s3327_s28 + $0x398] sm:$0xff]  ;;  %v693_v4 = vld [vmem:[%s3327_s28 + $0x3a0] sm:$0xff] }
  0x34   : > { %690 = vst [vmem:[%s3332_s29 + $0x210] sm:$0xff] %v689_v2  ;;  %692 = vst [vmem:[%s3332_s29 + $0x218] sm:$0xff] %v691_v3  ;;  %v695_v5 = vld [vmem:[%s3327_s28 + $0x3a8] sm:$0xff]  ;;  %v697_v6 = vld [vmem:[%s3327_s28 + $0x3b0] sm:$0xff] }
  0x35   : > { %694 = vst [vmem:[%s3332_s29 + $0x220] sm:$0xff] %v693_v4  ;;  %v699_v7 = vld [vmem:[%s3327_s28 + $0x3b8] sm:$0xff]  ;;  %696 = vst [vmem:[%s3332_s29 + $0x228] sm:$0xff] %v695_v5  ;;  %v701_v8 = vld [vmem:[%s3327_s28 + $0x480] sm:$0xff] }
  0x36   : > { %698 = vst [vmem:[%s3332_s29 + $0x230] sm:$0xff] %v697_v6  ;;  %700 = vst [vmem:[%s3332_s29 + $0x238] sm:$0xff] %v699_v7  ;;  %v703_v9 = vld [vmem:[%s3327_s28 + $0x488] sm:$0xff]  ;;  %v705_v10 = vld [vmem:[%s3327_s28 + $0x490] sm:$0xff] }
  0x37   : > { %702 = vst [vmem:[%s3332_s29 + $0x240] sm:$0xff] %v701_v8  ;;  %704 = vst [vmem:[%s3332_s29 + $0x248] sm:$0xff] %v703_v9  ;;  %v707_v11 = vld [vmem:[%s3327_s28 + $0x498] sm:$0xff]  ;;  %v709_v12 = vld [vmem:[%s3327_s28 + $0x4a0] sm:$0xff] }
  0x38   : > { %706 = vst [vmem:[%s3332_s29 + $0x250] sm:$0xff] %v705_v10  ;;  %v711_v13 = vld [vmem:[%s3327_s28 + $0x4a8] sm:$0xff]  ;;  %708 = vst [vmem:[%s3332_s29 + $0x258] sm:$0xff] %v707_v11  ;;  %v713_v14 = vld [vmem:[%s3327_s28 + $0x4b0] sm:$0xff] }
  0x39   : > { %710 = vst [vmem:[%s3332_s29 + $0x260] sm:$0xff] %v709_v12  ;;  %712 = vst [vmem:[%s3332_s29 + $0x268] sm:$0xff] %v711_v13  ;;  %v715_v15 = vld [vmem:[%s3327_s28 + $0x4b8] sm:$0xff]  ;;  %v717_v16 = vld [vmem:[%s3327_s28 + $0x4c0] sm:$0xff] }
  0x3a   : > { %714 = vst [vmem:[%s3332_s29 + $0x270] sm:$0xff] %v713_v14  ;;  %716 = vst [vmem:[%s3332_s29 + $0x278] sm:$0xff] %v715_v15  ;;  %v719_v17 = vld [vmem:[%s3327_s28 + $0x4c8] sm:$0xff]  ;;  %v721_v18 = vld [vmem:[%s3327_s28 + $0x4d0] sm:$0xff] }
  0x3b   : > { %718 = vst [vmem:[%s3332_s29 + $0x280] sm:$0xff] %v717_v16  ;;  %v723_v19 = vld [vmem:[%s3327_s28 + $0x4d8] sm:$0xff]  ;;  %720 = vst [vmem:[%s3332_s29 + $0x288] sm:$0xff] %v719_v17  ;;  %v725_v20 = vld [vmem:[%s3327_s28 + $0x4e0] sm:$0xff] }
  0x3c   : > { %722 = vst [vmem:[%s3332_s29 + $0x290] sm:$0xff] %v721_v18  ;;  %724 = vst [vmem:[%s3332_s29 + $0x298] sm:$0xff] %v723_v19  ;;  %v727_v21 = vld [vmem:[%s3327_s28 + $0x4e8] sm:$0xff]  ;;  %v729_v22 = vld [vmem:[%s3327_s28 + $0x4f0] sm:$0xff] }
  0x3d   : > { %726 = vst [vmem:[%s3332_s29 + $0x2a0] sm:$0xff] %v725_v20  ;;  %728 = vst [vmem:[%s3332_s29 + $0x2a8] sm:$0xff] %v727_v21  ;;  %v731_v23 = vld [vmem:[%s3327_s28 + $0x4f8] sm:$0xff]  ;;  %v733_v24 = vld [vmem:[%s3327_s28 + $0x500] sm:$0xff] }
  0x3e   : > { %730 = vst [vmem:[%s3332_s29 + $0x2b0] sm:$0xff] %v729_v22  ;;  %v735_v25 = vld [vmem:[%s3327_s28 + $0x508] sm:$0xff]  ;;  %732 = vst [vmem:[%s3332_s29 + $0x2b8] sm:$0xff] %v731_v23  ;;  %v737_v26 = vld [vmem:[%s3327_s28 + $0x510] sm:$0xff] }
  0x3f   : > { %734 = vst [vmem:[%s3332_s29 + $0x2c0] sm:$0xff] %v733_v24  ;;  %736 = vst [vmem:[%s3332_s29 + $0x2c8] sm:$0xff] %v735_v25  ;;  %v739_v27 = vld [vmem:[%s3327_s28 + $0x518] sm:$0xff]  ;;  %v741_v28 = vld [vmem:[%s3327_s28 + $0x520] sm:$0xff] }
  0x40   : > { %738 = vst [vmem:[%s3332_s29 + $0x2d0] sm:$0xff] %v737_v26  ;;  %740 = vst [vmem:[%s3332_s29 + $0x2d8] sm:$0xff] %v739_v27  ;;  %v743_v29 = vld [vmem:[%s3327_s28 + $0x528] sm:$0xff]  ;;  %v745_v30 = vld [vmem:[%s3327_s28 + $0x530] sm:$0xff] }
  0x41   : > { %742 = vst [vmem:[%s3332_s29 + $0x2e0] sm:$0xff] %v741_v28  ;;  %v747_v31 = vld [vmem:[%s3327_s28 + $0x538] sm:$0xff]  ;;  %744 = vst [vmem:[%s3332_s29 + $0x2e8] sm:$0xff] %v743_v29 }
  0x42   : > { %746 = vst [vmem:[%s3332_s29 + $0x2f0] sm:$0xff] %v745_v30  ;;  %748 = vst [vmem:[%s3332_s29 + $0x2f8] sm:$0xff] %v747_v31 }
  0x43 PF: > { %754 = sbr.rel (!%p3309_p3) target bundleno = 96 (0x60), region = 90  ;;  %s756_s30 = sand.u32 (%p3309_p3), 1, %s3209_s14  }
  0x44   : > { %s3009_s11 = smul.u32 (%p3309_p3), 1536, %s3217_s16 }
  0x45   : > { %s3139_s12 = smul.u32 (%p3309_p3), 384, %s756_s30 }
  0x46   : > { %s3530_s23 = scalar_lea.vmem (%p3309_p3), %s4723_s1, %s3009_s11 }
  0x47   : > { %v3010_v32 = vld [vmem:[%s3530_s23 + $0xc0] sm:$0xff] (%p3309_p3)  ;;  %v3011_v33 = vld [vmem:[%s3530_s23 + $0xc8] sm:$0xff] (%p3309_p3)  ;;  %v3012_v34 = vld [vmem:[%s3530_s23 + $0xd0] sm:$0xff] (%p3309_p3)  ;;  %s3535_s19 = scalar_lea.vmem (%p3309_p3), [#allocation3], %s3139_s12 }
  0x48   : > { %889 = vst [vmem:[%s3535_s19] sm:$0xff] (%p3309_p3), %v3010_v32  ;;  %891 = vst [vmem:[%s3535_s19 + $0x8] sm:$0xff] (%p3309_p3), %v3011_v33  ;;  %v3013_v35 = vld [vmem:[%s3530_s23 + $0xd8] sm:$0xff] (%p3309_p3)  ;;  %v3014_v36 = vld [vmem:[%s3530_s23 + $0xe0] sm:$0xff] (%p3309_p3) }
  0x49   : > { %893 = vst [vmem:[%s3535_s19 + $0x10] sm:$0xff] (%p3309_p3), %v3012_v34  ;;  %v3015_v37 = vld [vmem:[%s3530_s23 + $0xe8] sm:$0xff] (%p3309_p3)  ;;  %895 = vst [vmem:[%s3535_s19 + $0x18] sm:$0xff] (%p3309_p3), %v3013_v35  ;;  %v3016_v38 = vld [vmem:[%s3530_s23 + $0xf0] sm:$0xff] (%p3309_p3) }
  0x4a   : > { %897 = vst [vmem:[%s3535_s19 + $0x20] sm:$0xff] %v3014_v36  ;;  %899 = vst [vmem:[%s3535_s19 + $0x28] sm:$0xff] %v3015_v37  ;;  %v3017_v39 = vld [vmem:[%s3530_s23 + $0xf8] sm:$0xff]  ;;  %v3018_v40 = vld [vmem:[%s3530_s23 + $0x100] sm:$0xff] }
  0x4b   : > { %901 = vst [vmem:[%s3535_s19 + $0x30] sm:$0xff] %v3016_v38  ;;  %903 = vst [vmem:[%s3535_s19 + $0x38] sm:$0xff] %v3017_v39  ;;  %v3019_v41 = vld [vmem:[%s3530_s23 + $0x108] sm:$0xff]  ;;  %v3020_v42 = vld [vmem:[%s3530_s23 + $0x110] sm:$0xff] }
  0x4c   : > { %905 = vst [vmem:[%s3535_s19 + $0x40] sm:$0xff] %v3018_v40  ;;  %v3021_v43 = vld [vmem:[%s3530_s23 + $0x118] sm:$0xff]  ;;  %907 = vst [vmem:[%s3535_s19 + $0x48] sm:$0xff] %v3019_v41  ;;  %v3022_v44 = vld [vmem:[%s3530_s23 + $0x240] sm:$0xff] }
  0x4d   : > { %909 = vst [vmem:[%s3535_s19 + $0x50] sm:$0xff] %v3020_v42  ;;  %911 = vst [vmem:[%s3535_s19 + $0x58] sm:$0xff] %v3021_v43  ;;  %v3023_v45 = vld [vmem:[%s3530_s23 + $0x248] sm:$0xff]  ;;  %v3024_v46 = vld [vmem:[%s3530_s23 + $0x250] sm:$0xff] }
  0x4e   : > { %913 = vst [vmem:[%s3535_s19 + $0x60] sm:$0xff] %v3022_v44  ;;  %915 = vst [vmem:[%s3535_s19 + $0x68] sm:$0xff] %v3023_v45  ;;  %v3025_v47 = vld [vmem:[%s3530_s23 + $0x258] sm:$0xff]  ;;  %v3026_v48 = vld [vmem:[%s3530_s23 + $0x260] sm:$0xff] }
  0x4f   : > { %917 = vst [vmem:[%s3535_s19 + $0x70] sm:$0xff] %v3024_v46  ;;  %v3027_v49 = vld [vmem:[%s3530_s23 + $0x268] sm:$0xff]  ;;  %919 = vst [vmem:[%s3535_s19 + $0x78] sm:$0xff] %v3025_v47  ;;  %v3028_v50 = vld [vmem:[%s3530_s23 + $0x270] sm:$0xff] }
  0x50   : > { %921 = vst [vmem:[%s3535_s19 + $0x80] sm:$0xff] %v3026_v48  ;;  %923 = vst [vmem:[%s3535_s19 + $0x88] sm:$0xff] %v3027_v49  ;;  %v3029_v51 = vld [vmem:[%s3530_s23 + $0x278] sm:$0xff]  ;;  %v3030_v52 = vld [vmem:[%s3530_s23 + $0x280] sm:$0xff] }
  0x51   : > { %925 = vst [vmem:[%s3535_s19 + $0x90] sm:$0xff] %v3028_v50  ;;  %927 = vst [vmem:[%s3535_s19 + $0x98] sm:$0xff] %v3029_v51  ;;  %v3031_v53 = vld [vmem:[%s3530_s23 + $0x288] sm:$0xff]  ;;  %v3032_v54 = vld [vmem:[%s3530_s23 + $0x290] sm:$0xff] }
  0x52   : > { %929 = vst [vmem:[%s3535_s19 + $0xa0] sm:$0xff] %v3030_v52  ;;  %v3033_v55 = vld [vmem:[%s3530_s23 + $0x298] sm:$0xff]  ;;  %931 = vst [vmem:[%s3535_s19 + $0xa8] sm:$0xff] %v3031_v53  ;;  %v3034_v56 = vld [vmem:[%s3530_s23 + $0x3c0] sm:$0xff] }
  0x53   : > { %933 = vst [vmem:[%s3535_s19 + $0xb0] sm:$0xff] %v3032_v54  ;;  %935 = vst [vmem:[%s3535_s19 + $0xb8] sm:$0xff] %v3033_v55  ;;  %v3035_v57 = vld [vmem:[%s3530_s23 + $0x3c8] sm:$0xff]  ;;  %v3036_v58 = vld [vmem:[%s3530_s23 + $0x3d0] sm:$0xff] }
  0x54   : > { %937 = vst [vmem:[%s3535_s19 + $0xc0] sm:$0xff] %v3034_v56  ;;  %939 = vst [vmem:[%s3535_s19 + $0xc8] sm:$0xff] %v3035_v57  ;;  %v3037_v59 = vld [vmem:[%s3530_s23 + $0x3d8] sm:$0xff]  ;;  %v3038_v60 = vld [vmem:[%s3530_s23 + $0x3e0] sm:$0xff] }
  0x55   : > { %941 = vst [vmem:[%s3535_s19 + $0xd0] sm:$0xff] %v3036_v58  ;;  %v3039_v61 = vld [vmem:[%s3530_s23 + $0x3e8] sm:$0xff]  ;;  %943 = vst [vmem:[%s3535_s19 + $0xd8] sm:$0xff] %v3037_v59  ;;  %v3040_v62 = vld [vmem:[%s3530_s23 + $0x3f0] sm:$0xff] }
  0x56   : > { %945 = vst [vmem:[%s3535_s19 + $0xe0] sm:$0xff] %v3038_v60  ;;  %947 = vst [vmem:[%s3535_s19 + $0xe8] sm:$0xff] %v3039_v61  ;;  %v3041_v63 = vld [vmem:[%s3530_s23 + $0x3f8] sm:$0xff]  ;;  %v3042_v0 = vld [vmem:[%s3530_s23 + $0x400] sm:$0xff] }
  0x57   : > { %949 = vst [vmem:[%s3535_s19 + $0xf0] sm:$0xff] %v3040_v62  ;;  %951 = vst [vmem:[%s3535_s19 + $0xf8] sm:$0xff] %v3041_v63  ;;  %v3043_v1 = vld [vmem:[%s3530_s23 + $0x408] sm:$0xff]  ;;  %v3044_v2 = vld [vmem:[%s3530_s23 + $0x410] sm:$0xff] }
  0x58   : > { %953 = vst [vmem:[%s3535_s19 + $0x100] sm:$0xff] %v3042_v0  ;;  %v3045_v3 = vld [vmem:[%s3530_s23 + $0x418] sm:$0xff]  ;;  %955 = vst [vmem:[%s3535_s19 + $0x108] sm:$0xff] %v3043_v1  ;;  %v3046_v4 = vld [vmem:[%s3530_s23 + $0x540] sm:$0xff] }
  0x59   : > { %957 = vst [vmem:[%s3535_s19 + $0x110] sm:$0xff] %v3044_v2  ;;  %959 = vst [vmem:[%s3535_s19 + $0x118] sm:$0xff] %v3045_v3  ;;  %v3047_v5 = vld [vmem:[%s3530_s23 + $0x548] sm:$0xff]  ;;  %v3048_v6 = vld [vmem:[%s3530_s23 + $0x550] sm:$0xff] }
  0x5a   : > { %961 = vst [vmem:[%s3535_s19 + $0x120] sm:$0xff] %v3046_v4  ;;  %963 = vst [vmem:[%s3535_s19 + $0x128] sm:$0xff] %v3047_v5  ;;  %v3049_v7 = vld [vmem:[%s3530_s23 + $0x558] sm:$0xff]  ;;  %v3050_v8 = vld [vmem:[%s3530_s23 + $0x560] sm:$0xff] }
  0x5b   : > { %965 = vst [vmem:[%s3535_s19 + $0x130] sm:$0xff] %v3048_v6  ;;  %v3051_v9 = vld [vmem:[%s3530_s23 + $0x568] sm:$0xff]  ;;  %967 = vst [vmem:[%s3535_s19 + $0x138] sm:$0xff] %v3049_v7  ;;  %v3052_v10 = vld [vmem:[%s3530_s23 + $0x570] sm:$0xff] }
  0x5c   : > { %969 = vst [vmem:[%s3535_s19 + $0x140] sm:$0xff] %v3050_v8  ;;  %971 = vst [vmem:[%s3535_s19 + $0x148] sm:$0xff] %v3051_v9  ;;  %v3053_v11 = vld [vmem:[%s3530_s23 + $0x578] sm:$0xff]  ;;  %v3054_v12 = vld [vmem:[%s3530_s23 + $0x580] sm:$0xff] }
  0x5d   : > { %973 = vst [vmem:[%s3535_s19 + $0x150] sm:$0xff] %v3052_v10  ;;  %975 = vst [vmem:[%s3535_s19 + $0x158] sm:$0xff] %v3053_v11  ;;  %v3055_v13 = vld [vmem:[%s3530_s23 + $0x588] sm:$0xff]  ;;  %v3056_v14 = vld [vmem:[%s3530_s23 + $0x590] sm:$0xff] }
  0x5e   : > { %977 = vst [vmem:[%s3535_s19 + $0x160] sm:$0xff] %v3054_v12  ;;  %v3057_v15 = vld [vmem:[%s3530_s23 + $0x598] sm:$0xff]  ;;  %979 = vst [vmem:[%s3535_s19 + $0x168] sm:$0xff] %v3055_v13 }
  0x5f   : > { %981 = vst [vmem:[%s3535_s19 + $0x170] sm:$0xff] %v3056_v14  ;;  %983 = vst [vmem:[%s3535_s19 + $0x178] sm:$0xff] %v3057_v15 }
  0x60 PF: > { %p3058_p6 = scmp.ge.s32.totalorder %s3221_s17, 1  ;;  %p988_p7 = scmp.lt.s32.totalorder %s3221_s17, 3 }
  0x62   : > { %p989_p8 = pnand %p3058_p6, %p988_p7 }
  0x63   : > { %v1907_v16 = vld [vmem:[%s4725_s3] sm:$0x3] (!%p989_p8)  ;;  %vm1939_vm0 = vcmask (!%p989_p8), 1041408   ;;  %s995_s26 = sand.u32 (!%p989_p8), 1, %s3205_s13   ;;  %v1170_v17 = vlaneseq (!%p989_p8)  ;;  %vm1322_vm1 = vcmask (!%p989_p8), 1046528   ;;  %vm1908_vm2 = vcmask (!%p989_p8), 31744  }
  0x64   : > { %992 = sbr.rel (%p989_p8) target bundleno = 707 (0x2c3), region = 128  ;;  %3134 = vmatprep.subr.msk.bf16.mxu0 (!%p989_p8), %vm1939_vm0, %v1907_v16  ;;  %v1941_v18 = vsel (!%p989_p8), %vm1939_vm0, %v1907_v16, 0  ;;  %3135 = vmatprep.subr.msk.bf16.mxu1 (!%p989_p8), %vm1939_vm0, %v1907_v16  ;;  %v3643_v20 = vld [vmem:[%s4724_s2] sm:$0xff] (!%p989_p8)  ;;  %vm2777_vm3 = vcmask (!%p989_p8), 1043456   ;;  %vm2374_vm6 = vcmask (!%p989_p8), 1045504   ;;  %vm2764_vm7 = vcmask (!%p989_p8), 64512  }
  0x65   : > { %s3140_s27 = smul.u32 (!%p989_p8), 768, %s995_s26  ;;  %3101 = vmatpush3.bf16.msra.mxu0 (!%p989_p8), %v1941_v18  ;;  %v3638_v19 = vshrl.u32 (!%p989_p8), %v1170_v17, 7  ;;  %3133 = vmatpush3.bf16.msra.mxu1 (!%p989_p8), %v1941_v18  ;;  %p1052_p9 = scmp.lt.s32.totalorder (!%p989_p8), %s3213_s15, 1 }
  0x66   : > { %s4063_s20 = smul.u32 (!%p989_p8), 384, %s995_s26 }
  0x67   : > { %s3645_s30 = scalar_lea.vmem (!%p989_p8), [#allocation2], %s3140_s27  ;;  %v1172_v22 = vsub.s32 (!%p989_p8), 0, %v3638_v19  ;;  %v1216_v23 = vsub.s32 (!%p989_p8), 1, %v3638_v19  ;;  %v1260_v27 = vsub.s32 (!%p989_p8), 2, %v3638_v19  ;;  %v1415_v28 = vsub.s32 (!%p989_p8), 3, %v3638_v19 }
  0x68   : > { %v1063_v21 = vld [vmem:[%s3645_s30] sm:$0xff] (!%p989_p8)  ;;  %v1064_v24 = vld [vmem:[%s3645_s30 + $0x8] sm:$0xff] (!%p989_p8)  ;;  %v3652_v25 = vld [vmem:[%s3645_s30 + $0x18] sm:$0xff] (!%p989_p8)  ;;  %v1459_v34 = vsub.s32 (!%p989_p8), 4, %v3638_v19  ;;  %v1503_v35 = vsub.s32 (!%p989_p8), 5, %v3638_v19  ;;  %v1657_v40 = vsub.s32 (!%p989_p8), 6, %v3638_v19 }
  0x69   : > { %v3655_v26 = vld [vmem:[%s3645_s30 + $0x20] sm:$0xff] (!%p989_p8)  ;;  %v1088_v30 = vld [vmem:[%s3645_s30 + $0xc8] sm:$0xff] (!%p989_p8)  ;;  %v3662_v31 = vld [vmem:[%s3645_s30 + $0xd8] sm:$0xff] (!%p989_p8)  ;;  %v3667_v32 = vrot.slane (!%p989_p8), %v3643_v20, %v1172_v22  ;;  %v3672_v33 = vrot.slane (!%p989_p8), %v3643_v20, %v1216_v23  ;;  %v3683_v38 = vrot.slane (!%p989_p8), %v3643_v20, %v1260_v27  ;;  %v3688_v39 = vrot.slane (!%p989_p8), %v3643_v20, %v1415_v28  ;;  %s4083_s13 = scalar_lea.vmem (!%p989_p8), [#allocation3], %s4063_s20 }
  0x6a   : > { %v1087_v29 = vld [vmem:[%s3645_s30 + $0xc0] sm:$0xff] (!%p989_p8)  ;;  %v1065_v36 = vld [vmem:[%s3645_s30 + $0x10] sm:$0x1] (!%p989_p8)  ;;  %v1701_v41 = vsub.s32 (!%p989_p8), 7, %v3638_v19  ;;  %v3699_v46 = vld [vmem:[%s3645_s30 + $0x28] sm:$0x1] (!%p989_p8)  ;;  %v3731_v16 = vrot.slane (!%p989_p8), %v3643_v20, %v1459_v34 }
  0x6b   : > { %v3678_v37 = vld [vmem:[%s3645_s30 + $0xe0] sm:$0xff]  ;;  %v1174_v42 = vmul.f32 %v3667_v32, %v1063_v21  ;;  %v1175_v43 = vmul.f32 %v3667_v32, %v1064_v24  ;;  %v1176_v44 = vmul.f32 %v3667_v32, %v3652_v25  ;;  %v1177_v45 = vmul.f32 %v3667_v32, %v3655_v26  ;;  %v1104_v52 = vld [vmem:[%s3645_s30 + $0x188] sm:$0xff]  ;;  %v1106_v57 = vld [vmem:[%s3645_s30 + $0x198] sm:$0xff]  ;;  %s4741_s15 = smov (!%p1052_p9, %s3213_s15), 1 }
  0x6c   : > { %v1218_v47 = vmul.f32 %v3672_v33, %v1087_v29  ;;  %v1219_v48 = vmul.f32 %v3672_v33, %v1088_v30  ;;  %v1220_v49 = vmul.f32 %v3672_v33, %v3662_v31  ;;  %v1221_v50 = vmul.f32 %v3672_v33, %v3678_v37  ;;  %v1103_v51 = vld [vmem:[%s3645_s30 + $0x180] sm:$0xff]  ;;  %v1128_v12 = vld [vmem:[%s3645_s30 + $0x248] sm:$0xff]  ;;  %v1105_v17 = vld [vmem:[%s3645_s30 + $0x190] sm:$0x1]  ;;  %s3083_s19 = sshll.u32 %s4741_s15, 6 }
  0x6d   : > { %v1262_v53 = vmul.f32 %v3683_v38, %v1063_v21  ;;  %v1263_v54 = vmul.f32 %v3683_v38, %v1064_v24  ;;  %v1264_v55 = vmul.f32 %v3683_v38, %v1065_v36  ;;  %v1265_v56 = vmul.f32 %v3683_v38, %v3652_v25  ;;  %v1107_v62 = vld [vmem:[%s3645_s30 + $0x1a0] sm:$0xff]  ;;  %s4689_s26 = scalar_lea.vmem %s4732_s10, %s3083_s19 }
  0x6e   : > { %v1238_v58 = vadd.f32 %v1218_v47, %v1174_v42  ;;  %v1239_v59 = vadd.f32 %v1219_v48, %v1175_v43  ;;  %v1240_v60 = vadd.f32 %v1220_v49, %v1176_v44  ;;  %v1241_v61 = vadd.f32 %v1221_v50, %v1177_v45  ;;  %v1127_v7 = vld [vmem:[%s3645_s30 + $0x240] sm:$0xff]  ;;  %v3748_v49 = vld [vmem:[%s4724_s2 + $0x8] ss:$0 sm:$0xff] }
  0x6f   : > { %v1266_v63 = vmul.f32 %v3683_v38, %v3655_v26  ;;  %v1267_v0 = vmul.f32 %v3683_v38, %v3699_v46  ;;  %v1323_v1 = vrot.slane %v1262_v53, 1  ;;  %v1324_v2 = vrot.slane %v1263_v54, 1 }
  0x70   : > { %v1326_v3 = vrot.slane %v1264_v55, 1  ;;  %v1328_v4 = vrot.slane %v1265_v56, 1  ;;  %v1417_v5 = vmul.f32 %v3688_v39, %v1103_v51  ;;  %v1418_v6 = vmul.f32 %v3688_v39, %v1104_v52 }
  0x71   : > { %v1325_v8 = vsel %vm1322_vm1, %v1323_v1, %v1324_v2  ;;  %v1329_v9 = vrot.slane %v1266_v63, 1  ;;  %v1331_v10 = vrot.slane %v1267_v0, 1  ;;  %v1419_v11 = vmul.f32 %v3688_v39, %v1106_v57 }
  0x72   : > { %v1327_v13 = vsel %vm1322_vm1, %v1324_v2, %v1326_v3  ;;  %v1393_v14 = vadd.f32 %v1325_v8, %v1238_v58  ;;  %v1420_v15 = vmul.f32 %v3688_v39, %v1107_v62  ;;  %v3739_v29 = vrot.slane %v3643_v20, %v1503_v35  ;;  %v3775_v2 = vld [vmem:[%s3645_s30 + $0x30] sm:$0xff] }
  0x73   : > { %v1330_v18 = vsel %vm1322_vm1, %v1328_v4, %v1329_v9  ;;  %v1332_v21 = vsel %vm1322_vm1, %v1329_v9, %v1331_v10  ;;  %v1394_v24 = vadd.f32 %v1327_v13, %v1239_v59  ;;  %v1461_v43 = vmul.f32 %v3731_v16, %v1127_v7  ;;  %v1091_v7 = vld [vmem:[%s3645_s30 + $0xf0] sm:$0xff] }
  0x74   : > { %v1395_v30 = vadd.f32 %v1330_v18, %v1240_v60  ;;  %v1396_v36 = vadd.f32 %v1332_v21, %v1241_v61  ;;  %v1437_v42 = vadd.f32 %v1417_v5, %v1393_v14  ;;  %v1462_v45 = vmul.f32 %v3731_v16, %v1128_v12  ;;  %v1092_v12 = vld [vmem:[%s3645_s30 + $0xf8] sm:$0xff]  ;;  %v1071_v18 = vld [vmem:[%s3645_s30 + $0x40] sm:$0x1] }
  0x75   : > { %v1438_v44 = vadd.f32 %v1418_v6, %v1394_v24  ;;  %v1505_v47 = vmul.f32 %v3739_v29, %v1103_v51  ;;  %v1506_v48 = vmul.f32 %v3739_v29, %v1104_v52  ;;  %v1507_v55 = vmul.f32 %v3739_v29, %v1105_v17  ;;  %v1070_v6 = vld [vmem:[%s3645_s30 + $0x38] sm:$0xff] }
  0x76   : > { %v3750_v50 = vadd.f32 %v1419_v11, %v1395_v30  ;;  %v3752_v53 = vadd.f32 %v1420_v15, %v1396_v36  ;;  %v1481_v54 = vadd.f32 %v1461_v43, %v1437_v42  ;;  %v1508_v58 = vmul.f32 %v3739_v29, %v1106_v57  ;;  %v1129_v30 = vld [vmem:[%s3645_s30 + $0x258] sm:$0xff] }
  0x77   : > { %v1482_v56 = vadd.f32 %v1462_v45, %v1438_v44  ;;  %v3757_v51 = vmul.f32 %v3739_v29, %v1107_v62  ;;  %v1565_v52 = vrot.slane %v1505_v47, 1  ;;  %v1566_v59 = vrot.slane %v1506_v48, 1  ;;  %v1108_v44 = vld [vmem:[%s3645_s30 + $0x1a8] sm:$0x1]  ;;  %v1130_v45 = vld [vmem:[%s3645_s30 + $0x260] sm:$0xff] }
  0x78   : > { %v1568_v60 = vrot.slane %v1507_v55, 1  ;;  %v3762_v61 = vrot.slane %v3643_v20, %v1657_v40  ;;  %v3767_v63 = vrot.slane %v3643_v20, %v1701_v41  ;;  %v1570_v0 = vrot.slane %v1508_v58, 1 }
  0x79   : > { %v1571_v57 = vrot.slane %v3757_v51, 1  ;;  %v1747_v62 = vmul.f32 %v3748_v49, %v3652_v25  ;;  %v1748_v1 = vmul.f32 %v3748_v49, %v3655_v26  ;;  %v1567_v3 = vsel %vm1322_vm1, %v1565_v52, %v1566_v59 }
  0x7a   : > { %v1569_v4 = vsel %vm1322_vm1, %v1566_v59, %v1568_v60  ;;  %v1659_v20 = vmul.f32 %v3762_v61, %v3652_v25  ;;  %v1660_v5 = vmul.f32 %v3762_v61, %v3655_v26  ;;  %v1635_v8 = vadd.f32 %v1567_v3, %v1481_v54 }
  0x7b   : > { %v1636_v9 = vadd.f32 %v1569_v4, %v1482_v56  ;;  %v1703_v10 = vmul.f32 %v3767_v63, %v3662_v31  ;;  %v1704_v11 = vmul.f32 %v3767_v63, %v3678_v37  ;;  %v1749_v25 = vmul.f32 %v3748_v49, %v3699_v46 }
  0x7c   : > { %v1807_v13 = vrot.slane %v1747_v62, 1  ;;  %v1808_v26 = vrot.slane %v1748_v1, 1  ;;  %v1178_v14 = vmul.f32 %v3667_v32, %v3775_v2  ;;  %v1679_v15 = vadd.f32 %v1659_v20, %v1635_v8 }
  0x7d   : > { %v1680_v17 = vadd.f32 %v1660_v5, %v1636_v9  ;;  %v1179_v21 = vmul.f32 %v3667_v32, %v1070_v6  ;;  %v1222_v31 = vmul.f32 %v3672_v33, %v1091_v7  ;;  %v1810_v24 = vrot.slane %v1749_v25, 1 }
  0x7e   : > { %v1809_v37 = vsel %vm1322_vm1, %v1807_v13, %v1808_v26  ;;  %v1223_v46 = vmul.f32 %v3672_v33, %v1092_v12  ;;  %v1268_v36 = vmul.f32 %v3683_v38, %v3775_v2  ;;  %v1723_v42 = vadd.f32 %v1703_v10, %v1679_v15 }
  0x7f   : > { %v1724_v43 = vadd.f32 %v1704_v11, %v1680_v17  ;;  %v1242_v47 = vadd.f32 %v1222_v31, %v1178_v14  ;;  %v1269_v48 = vmul.f32 %v3683_v38, %v1070_v6  ;;  %v1811_v54 = vsel %vm1322_vm1, %v1808_v26, %v1810_v24  ;;  %v3820_v14 = vld [vmem:[%s3645_s30 + $0x48] sm:$0xff] }
  0x80   : > { %v1243_v55 = vadd.f32 %v1223_v46, %v1179_v21  ;;  %v1270_v56 = vmul.f32 %v3683_v38, %v1071_v18  ;;  %v1333_v58 = vrot.slane %v1268_v36, 1  ;;  %v1877_v52 = vadd.f32 %v1809_v37, %v1723_v42  ;;  %v3826_v21 = vld [vmem:[%s3645_s30 + $0x50] sm:$0xff]  ;;  %v1093_v31 = vld [vmem:[%s3645_s30 + $0x108] sm:$0xff] }
  0x81   : > { %v1878_v59 = vadd.f32 %v1811_v54, %v1724_v43  ;;  %v1334_v60 = vrot.slane %v1269_v48, 1  ;;  %v1463_v62 = vmul.f32 %v3731_v16, %v1129_v30  ;;  %v1464_v3 = vmul.f32 %v3731_v16, %v1130_v45  ;;  %v1094_v46 = vld [vmem:[%s3645_s30 + $0x110] sm:$0xff] }
  0x82   : > { %v1336_v1 = vrot.slane %v1270_v56, 1  ;;  %v1510_v4 = vmul.f32 %v3739_v29, %v1108_v44  ;;  %v1572_v20 = vsel %vm1322_vm1, %v1570_v0, %v1571_v57  ;;  %v1661_v10 = vmul.f32 %v3762_v61, %v3775_v2  ;;  %v1109_v48 = vld [vmem:[%s3645_s30 + $0x1b0] sm:$0xff] }
  0x83   : > { %v1897_v5 = vpack.c.bf16 %v1878_v59, %v1877_v52  ;;  %v1335_v8 = vsel %vm1322_vm1, %v1333_v58, %v1334_v60  ;;  %v1483_v9 = vadd.f32 %v1463_v62, %v3750_v50  ;;  %v1484_v13 = vadd.f32 %v1464_v3, %v3752_v53  ;;  %v1131_v56 = vld [vmem:[%s3645_s30 + $0x270] sm:$0xff]  ;;  %v1132_v58 = vld [vmem:[%s3645_s30 + $0x278] sm:$0xff] }
  0x84   : > { %v1337_v11 = vsel %vm1322_vm1, %v1334_v60, %v1336_v1  ;;  %v1397_v25 = vadd.f32 %v1335_v8, %v1242_v47  ;;  %v1573_v26 = vrot.slane %v1510_v4, 1  ;;  %v1662_v17 = vmul.f32 %v3762_v61, %v1070_v6  ;;  %v1074_v47 = vld [vmem:[%s3645_s30 + $0x58] sm:$0x1] }
  0x85   : > { %3102 = vmatprep.mubr.msk.bf16.mxu0 %vm1908_vm2, %v1897_v5  ;;  %v1398_v0 = vadd.f32 %v1337_v11, %v1243_v55  ;;  %v1637_v15 = vadd.f32 %v1572_v20, %v1483_v9  ;;  %v1705_v50 = vmul.f32 %v3767_v63, %v1091_v7  ;;  %v1706_v53 = vmul.f32 %v3767_v63, %v1092_v12  ;;  %v1111_v11 = vld [vmem:[%s3645_s30 + $0x1c0] sm:$0x1] }
  0x86   : > { %v1574_v37 = vsel %vm1322_vm1, %v1571_v57, %v1573_v26  ;;  %v1750_v24 = vmul.f32 %v3748_v49, %v3775_v2  ;;  %v1751_v30 = vmul.f32 %v3748_v49, %v1070_v6  ;;  %v1752_v42 = vmul.f32 %v3748_v49, %v1071_v18  ;;  %v1110_v18 = vld [vmem:[%s3645_s30 + $0x1b8] sm:$0xff] }
  0x87   : > { %v1638_v36 = vadd.f32 %v1574_v37, %v1484_v13  ;;  %v1681_v7 = vadd.f32 %v1661_v10, %v1637_v15  ;;  %v1180_v51 = vmul.f32 %v3667_v32, %v3820_v14  ;;  %v1181_v12 = vmul.f32 %v3667_v32, %v3826_v21 }
  0x88   : > { %v1812_v57 = vrot.slane %v1750_v24, 1  ;;  %v1813_v43 = vrot.slane %v1751_v30, 1  ;;  %v1224_v2 = vmul.f32 %v3672_v33, %v1093_v31  ;;  %v1815_v45 = vrot.slane %v1752_v42, 1 }
  0x89   : > { %v1682_v44 = vadd.f32 %v1662_v17, %v1638_v36  ;;  %v1725_v6 = vadd.f32 %v1705_v50, %v1681_v7  ;;  %v1225_v54 = vmul.f32 %v3672_v33, %v1094_v46  ;;  %v1271_v59 = vmul.f32 %v3683_v38, %v3820_v14 }
  0x8a   : > { %v1814_v55 = vsel %vm1322_vm1, %v1812_v57, %v1813_v43  ;;  %v1244_v52 = vadd.f32 %v1224_v2, %v1180_v51  ;;  %v1272_v60 = vmul.f32 %v3683_v38, %v3826_v21  ;;  %v1816_v1 = vsel %vm1322_vm1, %v1813_v43, %v1815_v45 }
  0x8b   : > { %v1726_v62 = vadd.f32 %v1706_v53, %v1682_v44  ;;  %v1879_v3 = vadd.f32 %v1814_v55, %v1725_v6  ;;  %v1245_v4 = vadd.f32 %v1225_v54, %v1181_v12  ;;  %v1273_v20 = vmul.f32 %v3683_v38, %v1074_v47  ;;  %v3870_v6 = vld [vmem:[%s3645_s30 + $0x60] sm:$0xff] }
  0x8c   : > { %v1338_v5 = vrot.slane %v1271_v59, 1  ;;  %v1339_v8 = vrot.slane %v1272_v60, 1  ;;  %v1421_v9 = vmul.f32 %v3688_v39, %v1109_v48  ;;  %v1422_v13 = vmul.f32 %v3688_v39, %v1110_v18  ;;  %v1095_v59 = vld [vmem:[%s3645_s30 + $0x120] sm:$0xff]  ;;  %v1096_v60 = vld [vmem:[%s3645_s30 + $0x128] sm:$0xff] }
  0x8d   : > { %v1880_v10 = vadd.f32 %v1816_v1, %v1726_v62  ;;  %v1465_v26 = vmul.f32 %v3731_v16, %v1131_v56  ;;  %v1466_v15 = vmul.f32 %v3731_v16, %v1132_v58  ;;  %v1341_v50 = vrot.slane %v1273_v20, 1  ;;  %v1077_v20 = vld [vmem:[%s3645_s30 + $0x70] sm:$0x1] }
  0x8e   : > { %v1340_v17 = vsel %vm1322_vm1, %v1338_v5, %v1339_v8  ;;  %v1441_v37 = vadd.f32 %v1421_v9, %v1397_v25  ;;  %v1511_v53 = vmul.f32 %v3739_v29, %v1109_v48  ;;  %v1442_v36 = vadd.f32 %v1422_v13, %v1398_v0  ;;  %v3873_v0 = vld [vmem:[%s3645_s30 + $0x68] sm:$0xff] }
  0x8f   : > { %v1898_v24 = vpack.c.bf16 %v1880_v10, %v1879_v3  ;;  %v1399_v30 = vadd.f32 %v1340_v17, %v1244_v52  ;;  %v1512_v7 = vmul.f32 %v3739_v29, %v1110_v18  ;;  %v1342_v42 = vsel %vm1322_vm1, %v1339_v8, %v1341_v50  ;;  %v1112_v5 = vld [vmem:[%s3645_s30 + $0x1c8] sm:$0xff] }
  0x90   : > { %v1485_v51 = vadd.f32 %v1465_v26, %v1441_v37  ;;  %v1513_v57 = vmul.f32 %v3739_v29, %v1111_v11  ;;  %v1575_v43 = vrot.slane %v1511_v53, 1  ;;  %v1400_v12 = vadd.f32 %v1342_v42, %v1245_v4  ;;  %v1133_v17 = vld [vmem:[%s3645_s30 + $0x288] sm:$0xff]  ;;  %v1134_v53 = vld [vmem:[%s3645_s30 + $0x290] sm:$0xff] }
  0x91   : > { %3103 = vmatmul.mubr.msk.bf16.vlgmr.msra.gmra.mrb[0].mxu0 %vm1908_vm2, %v1898_v24  ;;  %v1486_v25 = vadd.f32 %v1466_v15, %v1442_v36  ;;  %v1576_v2 = vrot.slane %v1512_v7, 1  ;;  %v1663_v44 = vmul.f32 %v3762_v61, %v3820_v14  ;;  %v1664_v48 = vmul.f32 %v3762_v61, %v3826_v21  ;;  %v1113_v15 = vld [vmem:[%s3645_s30 + $0x1d0] sm:$0xff] }
  0x92   : > { %v1578_v45 = vrot.slane %v1513_v57, 1  ;;  %v1707_v54 = vmul.f32 %v3767_v63, %v1093_v31  ;;  %v1708_v55 = vmul.f32 %v3767_v63, %v1094_v46  ;;  %v1753_v56 = vmul.f32 %v3748_v49, %v3820_v14 }
  0x93   : > { %v1577_v18 = vsel %vm1322_vm1, %v1575_v43, %v1576_v2  ;;  %v1754_v58 = vmul.f32 %v3748_v49, %v3826_v21  ;;  %v1755_v52 = vmul.f32 %v3748_v49, %v1074_v47  ;;  %v1182_v31 = vmul.f32 %v3667_v32, %v3870_v6 }
  0x94   : > { %v1579_v62 = vsel %vm1322_vm1, %v1576_v2, %v1578_v45  ;;  %v1639_v1 = vadd.f32 %v1577_v18, %v1485_v51  ;;  %v1183_v46 = vmul.f32 %v3667_v32, %v3873_v0  ;;  %v1817_v14 = vrot.slane %v1753_v56, 1  ;;  %v1114_v18 = vld [vmem:[%s3645_s30 + $0x1d8] sm:$0x1] }
  0x95   : > { %v1640_v3 = vadd.f32 %v1579_v62, %v1486_v25  ;;  %v1818_v4 = vrot.slane %v1754_v58, 1  ;;  %v1820_v21 = vrot.slane %v1755_v52, 1  ;;  %v1226_v8 = vmul.f32 %v3672_v33, %v1095_v59 }
  0x96   : > { %v1683_v47 = vadd.f32 %v1663_v44, %v1639_v1  ;;  %v1227_v9 = vmul.f32 %v3672_v33, %v1096_v60  ;;  %v1274_v10 = vmul.f32 %v3683_v38, %v3870_v6  ;;  %v1275_v50 = vmul.f32 %v3683_v38, %v3873_v0 }
  0x97   : > { %v1684_v11 = vadd.f32 %v1664_v48, %v1640_v3  ;;  %v1819_v13 = vsel %vm1322_vm1, %v1817_v14, %v1818_v4  ;;  %v1821_v26 = vsel %vm1322_vm1, %v1818_v4, %v1820_v21  ;;  %v1246_v24 = vadd.f32 %v1226_v8, %v1182_v31  ;;  %v3919_v8 = vld [vmem:[%s3645_s30 + $0x78] sm:$0xff] }
  0x98   : > { %v1727_v37 = vadd.f32 %v1707_v54, %v1683_v47  ;;  %v1247_v36 = vadd.f32 %v1227_v9, %v1183_v46  ;;  %v1276_v7 = vmul.f32 %v3683_v38, %v1077_v20  ;;  %v1343_v51 = vrot.slane %v1274_v10, 1  ;;  %v3922_v9 = vld [vmem:[%s3645_s30 + $0x80] sm:$0xff] }
  0x99   : > { %v1728_v42 = vadd.f32 %v1708_v55, %v1684_v11  ;;  %v1344_v57 = vrot.slane %v1275_v50, 1  ;;  %v1423_v43 = vmul.f32 %v3688_v39, %v1112_v5  ;;  %v1424_v44 = vmul.f32 %v3688_v39, %v1113_v15 }
  0x9a   : > { %v1881_v25 = vadd.f32 %v1819_v13, %v1727_v37  ;;  %v1346_v2 = vrot.slane %v1276_v7, 1  ;;  %v1467_v45 = vmul.f32 %v3731_v16, %v1133_v17  ;;  %v1468_v55 = vmul.f32 %v3731_v16, %v1134_v53  ;;  %v1098_v37 = vld [vmem:[%s3645_s30 + $0x140] sm:$0xff]  ;;  %v1080_v7 = vld [vmem:[%s3645_s30 + $0x88] sm:$0x1] }
  0x9b   : > { %v1882_v48 = vadd.f32 %v1821_v26, %v1728_v42  ;;  %v1345_v54 = vsel %vm1322_vm1, %v1343_v51, %v1344_v57  ;;  %v1443_v56 = vadd.f32 %v1423_v43, %v1399_v30  ;;  %v1444_v62 = vadd.f32 %v1424_v44, %v1400_v12  ;;  %v3925_v12 = vld [vmem:[%s3645_s30 + $0x138] sm:$0xff] }
  0x9c   : > { %v1347_v58 = vsel %vm1322_vm1, %v1344_v57, %v1346_v2  ;;  %v1401_v52 = vadd.f32 %v1345_v54, %v1246_v24  ;;  %v1514_v1 = vmul.f32 %v3739_v29, %v1112_v5  ;;  %v1515_v14 = vmul.f32 %v3739_v29, %v1113_v15  ;;  %v1115_v57 = vld [vmem:[%s3645_s30 + $0x1e0] sm:$0xff] }
  0x9d   : > { %v1899_v31 = vpack.c.bf16 %v1882_v48, %v1881_v25  ;;  %v1402_v46 = vadd.f32 %v1347_v58, %v1247_v36  ;;  %v1487_v3 = vadd.f32 %v1467_v45, %v1443_v56  ;;  %v1488_v4 = vadd.f32 %v1468_v55, %v1444_v62  ;;  %v1116_v45 = vld [vmem:[%s3645_s30 + $0x1e8] sm:$0xff]  ;;  %v1135_v48 = vld [vmem:[%s3645_s30 + $0x2a0] sm:$0xff] }
  0x9e   : > { %v1516_v21 = vmul.f32 %v3739_v29, %v1114_v18  ;;  %v1580_v47 = vrot.slane %v1514_v1, 1  ;;  %v1665_v30 = vmul.f32 %v3762_v61, %v3870_v6  ;;  %v1581_v5 = vrot.slane %v1515_v14, 1  ;;  %v1136_v58 = vld [vmem:[%s3645_s30 + $0x2a8] sm:$0xff] }
  0x9f   : > { %3106 = vmatprep.mubr.msk.bf16.mxu0 %vm1908_vm2, %v1899_v31  ;;  %v1666_v10 = vmul.f32 %v3762_v61, %v3873_v0  ;;  %v1709_v11 = vmul.f32 %v3767_v63, %v1095_v59  ;;  %v1710_v13 = vmul.f32 %v3767_v63, %v1096_v60  ;;  %v1756_v15 = vmul.f32 %v3748_v49, %v3870_v6 }
  0xa0   : > { %v1583_v26 = vrot.slane %v1516_v21, 1  ;;  %v1757_v17 = vmul.f32 %v3748_v49, %v3873_v0  ;;  %v1758_v50 = vmul.f32 %v3748_v49, %v1077_v20  ;;  %v1582_v53 = vsel %vm1322_vm1, %v1580_v47, %v1581_v5 }
  0xa1   : > { %v1184_v24 = vmul.f32 %v3667_v32, %v3919_v8  ;;  %v1185_v59 = vmul.f32 %v3667_v32, %v3922_v9  ;;  %v1228_v60 = vmul.f32 %v3672_v33, %v3925_v12  ;;  %v1641_v36 = vadd.f32 %v1582_v53, %v1487_v3 }
  0xa2   : > { %v1584_v6 = vsel %vm1322_vm1, %v1581_v5, %v1583_v26  ;;  %v1822_v0 = vrot.slane %v1756_v15, 1  ;;  %v1823_v20 = vrot.slane %v1757_v17, 1  ;;  %v1825_v51 = vrot.slane %v1758_v50, 1  ;;  %v1117_v15 = vld [vmem:[%s3645_s30 + $0x1f0] sm:$0x1] }
  0xa3   : > { %v1642_v42 = vadd.f32 %v1584_v6, %v1488_v4  ;;  %v1229_v43 = vmul.f32 %v3672_v33, %v1098_v37  ;;  %v1248_v25 = vadd.f32 %v1228_v60, %v1184_v24  ;;  %v1685_v2 = vadd.f32 %v1665_v30, %v1641_v36 }
  0xa4   : > { %v1824_v44 = vsel %vm1322_vm1, %v1822_v0, %v1823_v20  ;;  %v1277_v18 = vmul.f32 %v3683_v38, %v3919_v8  ;;  %v1278_v54 = vmul.f32 %v3683_v38, %v3922_v9  ;;  %v1826_v55 = vsel %vm1322_vm1, %v1823_v20, %v1825_v51  ;;  %v3974_v51 = vld [vmem:[%s3645_s30 + $0x90] sm:$0xff] }
  0xa5   : > { %v1686_v56 = vadd.f32 %v1666_v10, %v1642_v42  ;;  %v1249_v62 = vadd.f32 %v1229_v43, %v1185_v59  ;;  %v1279_v1 = vmul.f32 %v3683_v38, %v1080_v7  ;;  %v1729_v31 = vadd.f32 %v1709_v11, %v1685_v2  ;;  %v3977_v43 = vld [vmem:[%s3645_s30 + $0x98] sm:$0xff] }
  0xa6   : > { %v1348_v3 = vrot.slane %v1277_v18, 1  ;;  %v1349_v14 = vrot.slane %v1278_v54, 1  ;;  %v1425_v4 = vmul.f32 %v3688_v39, %v1115_v57  ;;  %v1426_v30 = vmul.f32 %v3688_v39, %v1116_v45  ;;  %v1099_v54 = vld [vmem:[%s3645_s30 + $0x150] sm:$0xff] }
  0xa7   : > { %v1730_v21 = vadd.f32 %v1710_v13, %v1686_v56  ;;  %v1351_v47 = vrot.slane %v1279_v1, 1  ;;  %v1469_v5 = vmul.f32 %v3731_v16, %v1135_v48  ;;  %v1883_v26 = vadd.f32 %v1824_v44, %v1729_v31  ;;  %v1100_v56 = vld [vmem:[%s3645_s30 + $0x158] sm:$0xff] }
  0xa8   : > { %v1350_v10 = vsel %vm1322_vm1, %v1348_v3, %v1349_v14  ;;  %v1445_v17 = vadd.f32 %v1425_v4, %v1401_v52  ;;  %v1470_v50 = vmul.f32 %v3731_v16, %v1136_v58  ;;  %v1446_v13 = vadd.f32 %v1426_v30, %v1402_v46  ;;  %v1118_v30 = vld [vmem:[%s3645_s30 + $0x1f8] sm:$0xff] }
  0xa9   : > { %v1884_v11 = vadd.f32 %v1826_v55, %v1730_v21  ;;  %v1352_v53 = vsel %vm1322_vm1, %v1349_v14, %v1351_v47  ;;  %v3966_v24 = vadd.f32 %v1350_v10, %v1248_v25  ;;  %v1517_v6 = vmul.f32 %v3739_v29, %v1115_v57  ;;  %v1083_v14 = vld [vmem:[%s3645_s30 + $0xa0] sm:$0x1] }
  0xaa   : > { %v1404_v59 = vadd.f32 %v1352_v53, %v1249_v62  ;;  %v1489_v60 = vadd.f32 %v1469_v5, %v1445_v17  ;;  %v1518_v36 = vmul.f32 %v3739_v29, %v1116_v45  ;;  %v1490_v20 = vadd.f32 %v1470_v50, %v1446_v13  ;;  %v1119_v5 = vld [vmem:[%s3645_s30 + $0x200] sm:$0xff] }
  0xab   : > { %v1900_v0 = vpack.c.bf16 %v1884_v11, %v1883_v26  ;;  %v1519_v52 = vmul.f32 %v3739_v29, %v1117_v15  ;;  %v1667_v42 = vmul.f32 %v3762_v61, %v3919_v8  ;;  %v1585_v46 = vrot.slane %v1517_v6, 1  ;;  %v1137_v26 = vld [vmem:[%s3645_s30 + $0x2b8] sm:$0xff]  ;;  %v1138_v11 = vld [vmem:[%s3645_s30 + $0x2c0] sm:$0xff] }
  0xac   : > { %v1586_v25 = vrot.slane %v1518_v36, 1  ;;  %v1668_v57 = vmul.f32 %v3762_v61, %v3922_v9  ;;  %v1711_v2 = vmul.f32 %v3767_v63, %v3925_v12  ;;  %v1712_v45 = vmul.f32 %v3767_v63, %v1098_v37 }
  0xad   : > { %3107 = vmatmul.mubr.msk.bf16.gmra.mrb[4].mxu0 %vm1908_vm2, %v1900_v0  ;;  %v1588_v44 = vrot.slane %v1519_v52, 1  ;;  %v1759_v48 = vmul.f32 %v3748_v49, %v3919_v8  ;;  %v1760_v18 = vmul.f32 %v3748_v49, %v3922_v9  ;;  %v1761_v12 = vmul.f32 %v3748_v49, %v1080_v7  ;;  %v1120_v52 = vld [vmem:[%s3645_s30 + $0x208] sm:$0x1] }
  0xae   : > { %v1587_v55 = vsel %vm1322_vm1, %v1585_v46, %v1586_v25  ;;  %v1186_v58 = vmul.f32 %v3667_v32, %v3974_v51  ;;  %v1187_v37 = vmul.f32 %v3667_v32, %v3977_v43  ;;  %v1230_v4 = vmul.f32 %v3672_v33, %v1099_v54 }
  0xaf   : > { %v1589_v8 = vsel %vm1322_vm1, %v1586_v25, %v1588_v44  ;;  %v1643_v62 = vadd.f32 %v1587_v55, %v1489_v60  ;;  %v1827_v1 = vrot.slane %v1759_v48, 1  ;;  %v1828_v9 = vrot.slane %v1760_v18, 1 }
  0xb0   : > { %v1644_v31 = vadd.f32 %v1589_v8, %v1490_v20  ;;  %v1830_v3 = vrot.slane %v1761_v12, 1  ;;  %v1231_v7 = vmul.f32 %v3672_v33, %v1100_v56  ;;  %v1280_v15 = vmul.f32 %v3683_v38, %v3974_v51 }
  0xb1   : > { %v1687_v21 = vadd.f32 %v1667_v42, %v1643_v62  ;;  %v1829_v47 = vsel %vm1322_vm1, %v1827_v1, %v1828_v9  ;;  %v1281_v10 = vmul.f32 %v3683_v38, %v3977_v43  ;;  %v1250_v53 = vadd.f32 %v1230_v4, %v1186_v58 }
  0xb2   : > { %v1688_v17 = vadd.f32 %v1668_v57, %v1644_v31  ;;  %v1831_v50 = vsel %vm1322_vm1, %v1828_v9, %v1830_v3  ;;  %v1251_v13 = vadd.f32 %v1231_v7, %v1187_v37  ;;  %v1282_v6 = vmul.f32 %v3683_v38, %v1083_v14 }
  0xb3   : > { %v1731_v60 = vadd.f32 %v1711_v2, %v1687_v21  ;;  %v1353_v36 = vrot.slane %v1280_v15, 1  ;;  %v1354_v0 = vrot.slane %v1281_v10, 1  ;;  %v1427_v42 = vmul.f32 %v3688_v39, %v1118_v30  ;;  %v4038_v15 = vld [vmem:[%s3645_s30 + $0xb0] sm:$0xff]  ;;  %v4041_v10 = vld [vmem:[%s3645_s30 + $0x168] sm:$0xff] }
  0xb4   : > { %v1732_v20 = vadd.f32 %v1712_v45, %v1688_v17  ;;  %v1428_v46 = vmul.f32 %v3688_v39, %v1119_v5  ;;  %v1471_v25 = vmul.f32 %v3731_v16, %v1137_v26  ;;  %v1356_v48 = vrot.slane %v1282_v6, 1 }
  0xb5   : > { %v1885_v44 = vadd.f32 %v1829_v47, %v1731_v60  ;;  %v1355_v57 = vsel %vm1322_vm1, %v1353_v36, %v1354_v0  ;;  %v1472_v18 = vmul.f32 %v3731_v16, %v1138_v11  ;;  %v1447_v12 = vadd.f32 %v1427_v42, %v3966_v24  ;;  %v1121_v42 = vld [vmem:[%s3645_s30 + $0x210] sm:$0xff] }
  0xb6   : > { %v1886_v55 = vadd.f32 %v1831_v50, %v1732_v20  ;;  %v4018_v2 = vadd.f32 %v1355_v57, %v1250_v53  ;;  %v1448_v45 = vadd.f32 %v1428_v46, %v1404_v59  ;;  %v1357_v58 = vsel %vm1322_vm1, %v1354_v0, %v1356_v48  ;;  %v4028_v59 = vld [vmem:[%s3645_s30 + $0xa8] sm:$0xff]  ;;  %v1102_v53 = vld [vmem:[%s3645_s30 + $0x170] sm:$0xff]  ;;  %v1086_v0 = vld [vmem:[%s3645_s30 + $0xb8] sm:$0x1] }
  0xb7   : > { %v1520_v37 = vmul.f32 %v3739_v29, %v1118_v30  ;;  %v1521_v8 = vmul.f32 %v3739_v29, %v1119_v5  ;;  %v1522_v62 = vmul.f32 %v3739_v29, %v1120_v52  ;;  %v1406_v9 = vadd.f32 %v1357_v58, %v1251_v13  ;;  %v1122_v46 = vld [vmem:[%s3645_s30 + $0x218] sm:$0xff] }
  0xb8   : > { %v1901_v1 = vpack.c.bf16 %v1886_v55, %v1885_v44  ;;  %v1491_v31 = vadd.f32 %v1471_v25, %v1447_v12  ;;  %v1492_v3 = vadd.f32 %v1472_v18, %v1448_v45  ;;  %v1669_v24 = vmul.f32 %v3762_v61, %v3974_v51  ;;  %v1139_v18 = vld [vmem:[%s3645_s30 + $0x2d0] sm:$0xff] }
  0xb9   : > { %v1590_v4 = vrot.slane %v1520_v37, 1  ;;  %v1591_v7 = vrot.slane %v1521_v8, 1  ;;  %v1593_v21 = vrot.slane %v1522_v62, 1  ;;  %v1670_v47 = vmul.f32 %v3762_v61, %v3977_v43  ;;  %v1140_v37 = vld [vmem:[%s3645_s30 + $0x2d8] sm:$0xff] }
  0xba   : > { %3110 = vmatprep.mubr.msk.bf16.mxu0 %vm1908_vm2, %v1901_v1  ;;  %v1713_v30 = vmul.f32 %v3767_v63, %v1099_v54  ;;  %v1714_v5 = vmul.f32 %v3767_v63, %v1100_v56  ;;  %v1762_v26 = vmul.f32 %v3748_v49, %v3974_v51  ;;  %v1763_v11 = vmul.f32 %v3748_v49, %v3977_v43 }
  0xbb   : > { %v1592_v17 = vsel %vm1322_vm1, %v1590_v4, %v1591_v7  ;;  %v1594_v50 = vsel %vm1322_vm1, %v1591_v7, %v1593_v21  ;;  %v1764_v54 = vmul.f32 %v3748_v49, %v1083_v14  ;;  %v1188_v60 = vmul.f32 %v3667_v32, %v4028_v59 }
  0xbc   : > { %v1645_v56 = vadd.f32 %v1592_v17, %v1491_v31  ;;  %v1646_v13 = vadd.f32 %v1594_v50, %v1492_v3  ;;  %v1832_v51 = vrot.slane %v1762_v26, 1  ;;  %v1833_v6 = vrot.slane %v1763_v11, 1  ;;  %v1123_v26 = vld [vmem:[%s3645_s30 + $0x220] sm:$0x1] }
  0xbd   : > { %v1835_v36 = vrot.slane %v1764_v54, 1  ;;  %v1189_v20 = vmul.f32 %v3667_v32, %v4038_v15  ;;  %v1232_v43 = vmul.f32 %v3672_v33, %v4041_v10  ;;  %v1233_v25 = vmul.f32 %v3672_v33, %v1102_v53 }
  0xbe   : > { %v1689_v14 = vadd.f32 %v1669_v24, %v1645_v56  ;;  %v1690_v52 = vadd.f32 %v1670_v47, %v1646_v13  ;;  %v1283_v44 = vmul.f32 %v3683_v38, %v4028_v59  ;;  %v1834_v57 = vsel %vm1322_vm1, %v1832_v51, %v1833_v6 }
  0xbf   : > { %v1836_v48 = vsel %vm1322_vm1, %v1833_v6, %v1835_v36  ;;  %v1252_v55 = vadd.f32 %v1232_v43, %v1188_v60  ;;  %v1284_v12 = vmul.f32 %v3683_v38, %v4038_v15  ;;  %v1253_v8 = vadd.f32 %v1233_v25, %v1189_v20 }
  0xc0   : > { %v1733_v45 = vadd.f32 %v1713_v30, %v1689_v14  ;;  %v1734_v58 = vadd.f32 %v1714_v5, %v1690_v52  ;;  %v1285_v62 = vmul.f32 %v3683_v38, %v1086_v0  ;;  %v1358_v1 = vrot.slane %v1283_v44, 1  ;;  %v1145_v52 = vld [vmem:[%s4083_s13 + $0x10] sm:$0x1] }
  0xc1   : > { %v1359_v31 = vrot.slane %v1284_v12, 1  ;;  %v1429_v3 = vmul.f32 %v3688_v39, %v1121_v42  ;;  %v1430_v4 = vmul.f32 %v3688_v39, %v1122_v46  ;;  %v1473_v47 = vmul.f32 %v3731_v16, %v1139_v18  ;;  %v1124_v12 = vld [vmem:[%s3645_s30 + $0x228] sm:$0xff] }
  0xc2   : > { %v1887_v7 = vadd.f32 %v1834_v57, %v1733_v45  ;;  %v1888_v21 = vadd.f32 %v1836_v48, %v1734_v58  ;;  %v1361_v24 = vrot.slane %v1285_v62, 1  ;;  %v1474_v50 = vmul.f32 %v3731_v16, %v1140_v37  ;;  %v1125_v45 = vld [vmem:[%s3645_s30 + $0x230] sm:$0xff] }
  0xc3   : > { %v1360_v30 = vsel %vm1322_vm1, %v1358_v1, %v1359_v31  ;;  %v1449_v5 = vadd.f32 %v1429_v3, %v4018_v2  ;;  %v1450_v17 = vadd.f32 %v1430_v4, %v1406_v9  ;;  %v1523_v13 = vmul.f32 %v3739_v29, %v1121_v42  ;;  %v1152_v2 = vld [vmem:[%s4083_s13 + $0x60] sm:$0xff]  ;;  %v1153_v42 = vld [vmem:[%s4083_s13 + $0x68] sm:$0xff]  ;;  %v1126_v4 = vld [vmem:[%s3645_s30 + $0x238] sm:$0x1] }
  0xc4   : > { %v1902_v11 = vpack.c.bf16 %v1888_v21, %v1887_v7  ;;  %v1362_v54 = vsel %vm1322_vm1, %v1359_v31, %v1361_v24  ;;  %v1407_v56 = vadd.f32 %v1360_v30, %v1252_v55  ;;  %v1524_v36 = vmul.f32 %v3739_v29, %v1122_v46  ;;  %v1142_v31 = vld [vmem:[%s3645_s30 + $0x2f0] sm:$0xff] }
  0xc5   : > { %v1408_v51 = vadd.f32 %v1362_v54, %v1253_v8  ;;  %v1493_v60 = vadd.f32 %v1473_v47, %v1449_v5  ;;  %v1494_v6 = vadd.f32 %v1474_v50, %v1450_v17  ;;  %v1525_v9 = vmul.f32 %v3739_v29, %v1123_v26 }
  0xc6   : > { %3111 = vmatmul.mubr.msk.bf16.gmra.mrb[8].mxu0 %vm1908_vm2, %v1902_v11  ;;  %v1595_v20 = vrot.slane %v1523_v13, 1  ;;  %v1671_v43 = vmul.f32 %v3762_v61, %v4028_v59  ;;  %v1672_v14 = vmul.f32 %v3762_v61, %v4038_v15  ;;  %v1596_v46 = vrot.slane %v1524_v36, 1 }
  0xc7   : > { %v1715_v25 = vmul.f32 %v3767_v63, %v4041_v10  ;;  %v1716_v44 = vmul.f32 %v3767_v63, %v1102_v53  ;;  %v1765_v57 = vmul.f32 %v3748_v49, %v4028_v59  ;;  %v1598_v48 = vrot.slane %v1525_v9, 1  ;;  %v1141_v53 = vld [vmem:[%s3645_s30 + $0x2e8] sm:$0xff] }
  0xc8   : > { %v1766_v18 = vmul.f32 %v3748_v49, %v4038_v15  ;;  %v1767_v55 = vmul.f32 %v3748_v49, %v1086_v0  ;;  %v4105_v58 = vmul.f32 %v3672_v33, %v1152_v2  ;;  %v1597_v10 = vsel %vm1322_vm1, %v1595_v20, %v1596_v46 }
  0xc9   : > { %v1837_v37 = vrot.slane %v1765_v57, 1  ;;  %v4110_v8 = vmul.f32 %v3672_v33, %v1153_v42  ;;  %v4113_v59 = vmul.f32 %v3683_v38, %v1145_v52  ;;  %v1599_v15 = vsel %vm1322_vm1, %v1596_v46, %v1598_v48 }
  0xca   : > { %v1647_v62 = vadd.f32 %v1597_v10, %v1493_v60  ;;  %v1838_v1 = vrot.slane %v1766_v18, 1  ;;  %v1840_v0 = vrot.slane %v1767_v55, 1  ;;  %v1648_v3 = vadd.f32 %v1599_v15, %v1494_v6  ;;  %v1143_v60 = vld [vmem:[%s4083_s13] sm:$0xff]  ;;  %v4139_v15 = vld [vmem:[%s4083_s13 + $0x18] sm:$0xff] }
  0xcb   : > { %v1366_v7 = vrot.slane %v4113_v59, 1  ;;  %v1431_v21 = vmul.f32 %v3688_v39, %v1124_v12  ;;  %v1432_v24 = vmul.f32 %v3688_v39, %v1125_v45  ;;  %v1475_v5 = vmul.f32 %v3731_v16, %v1141_v53 }
  0xcc   : > { %v1691_v47 = vadd.f32 %v1671_v43, %v1647_v62  ;;  %v1839_v26 = vsel %vm1322_vm1, %v1837_v37, %v1838_v1  ;;  %v1841_v30 = vsel %vm1322_vm1, %v1838_v1, %v1840_v0  ;;  %v1692_v17 = vadd.f32 %v1672_v14, %v1648_v3  ;;  %v1144_v14 = vld [vmem:[%s4083_s13 + $0x8] sm:$0xff]  ;;  %v4143_v3 = vld [vmem:[%s4083_s13 + $0x20] sm:$0xff] }
  0xcd   : > { %v1451_v50 = vadd.f32 %v1431_v21, %v1407_v56  ;;  %v1452_v11 = vadd.f32 %v1432_v24, %v1408_v51  ;;  %v1476_v54 = vmul.f32 %v3731_v16, %v1142_v31  ;;  %v1526_v6 = vmul.f32 %v3739_v29, %v1124_v12 }
  0xce   : > { %v1735_v13 = vadd.f32 %v1715_v25, %v1691_v47  ;;  %v1527_v36 = vmul.f32 %v3739_v29, %v1125_v45  ;;  %v1528_v9 = vmul.f32 %v3739_v29, %v1126_v4  ;;  %v1736_v20 = vadd.f32 %v1716_v44, %v1692_v17 }
  0xcf   : > { %v1495_v43 = vadd.f32 %v1475_v5, %v1451_v50  ;;  %v1496_v46 = vadd.f32 %v1476_v54, %v1452_v11  ;;  %v1673_v57 = vmul.f32 %v3762_v61, %v1143_v60  ;;  %v1600_v56 = vrot.slane %v1526_v6, 1 }
  0xd0   : > { %v1889_v48 = vadd.f32 %v1839_v26, %v1735_v13  ;;  %v1601_v51 = vrot.slane %v1527_v36, 1  ;;  %v1603_v25 = vrot.slane %v1528_v9, 1  ;;  %v1890_v18 = vadd.f32 %v1841_v30, %v1736_v20  ;;  %v4165_v36 = vld [vmem:[%s4083_s13 + $0x28] sm:$0x1]  ;;  %v1158_v9 = vld [vmem:[%s4083_s13 + $0xc0] sm:$0xff] }
  0xd1   : > { %v1674_v55 = vmul.f32 %v3762_v61, %v1144_v14  ;;  %v1717_v12 = vmul.f32 %v3767_v63, %v1152_v2  ;;  %v1718_v44 = vmul.f32 %v3767_v63, %v1153_v42  ;;  %v1768_v37 = vmul.f32 %v3748_v49, %v1143_v60  ;;  %v4146_v2 = vld [vmem:[%s4083_s13 + $0x78] sm:$0xff]  ;;  %v4149_v42 = vld [vmem:[%s4083_s13 + $0x80] sm:$0xff] }
  0xd2   : > { %v1602_v45 = vsel %vm1322_vm1, %v1600_v56, %v1601_v51  ;;  %v1604_v10 = vsel %vm1322_vm1, %v1601_v51, %v1603_v25  ;;  %v1769_v53 = vmul.f32 %v3748_v49, %v1144_v14  ;;  %v1903_v62 = vpack.c.bf16 %v1890_v18, %v1889_v48  ;;  %v1161_v51 = vld [vmem:[%s4083_s13 + $0xd8] sm:$0xff]  ;;  %v1162_v25 = vld [vmem:[%s4083_s13 + $0xe0] sm:$0xff] }
  0xd3   : > { %v1649_v1 = vadd.f32 %v1602_v45, %v1495_v43  ;;  %v1650_v0 = vadd.f32 %v1604_v10, %v1496_v46  ;;  %v1770_v31 = vmul.f32 %v3748_v49, %v1145_v52  ;;  %v1842_v4 = vrot.slane %v1768_v37, 1 }
  0xd4   : > { %v1843_v21 = vrot.slane %v1769_v53, 1  ;;  %v1190_v24 = vmul.f32 %v3667_v32, %v1143_v60  ;;  %v1191_v47 = vmul.f32 %v3667_v32, %v1144_v14  ;;  %3114 = vmatprep.mubr.msk.bf16.mxu0 %vm1908_vm2, %v1903_v62  ;;  %v1192_v52 = vmul.f32 %v3667_v32, %v4139_v15 }
  0xd5   : > { %v1693_v26 = vadd.f32 %v1673_v57, %v1649_v1  ;;  %v1694_v30 = vadd.f32 %v1674_v55, %v1650_v0  ;;  %v1845_v49 = vrot.slane %v1770_v31, 1  ;;  %v1193_v17 = vmul.f32 %v3667_v32, %v4143_v3  ;;  %v1159_v32 = vld [vmem:[%s4083_s13 + $0xc8] sm:$0xff] }
  0xd6   : > { %v1844_v5 = vsel %vm1322_vm1, %v1842_v4, %v1843_v21  ;;  %v1236_v50 = vmul.f32 %v3672_v33, %v4146_v2  ;;  %v1237_v11 = vmul.f32 %v3672_v33, %v4149_v42  ;;  %v1254_v20 = vadd.f32 %v4105_v58, %v1190_v24  ;;  %v1160_v4 = vld [vmem:[%s4083_s13 + $0xd0] sm:$0x1] }
  0xd7   : > { %v1737_v54 = vadd.f32 %v1717_v12, %v1693_v26  ;;  %v1738_v13 = vadd.f32 %v1718_v44, %v1694_v30  ;;  %v1846_v6 = vsel %vm1322_vm1, %v1843_v21, %v1845_v49  ;;  %v1255_v43 = vadd.f32 %v4110_v8, %v1191_v47  ;;  %v1164_v12 = vld [vmem:[%s4083_s13 + $0x120] sm:$0xff]  ;;  %v1165_v44 = vld [vmem:[%s4083_s13 + $0x128] sm:$0xff] }
  0xd8   : > { %v1256_v46 = vadd.f32 %v1236_v50, %v1192_v52  ;;  %v1257_v57 = vadd.f32 %v1237_v11, %v1193_v17  ;;  %v1286_v48 = vmul.f32 %v3683_v38, %v1143_v60  ;;  %v1287_v18 = vmul.f32 %v3683_v38, %v1144_v14 }
  0xd9   : > { %v1891_v56 = vadd.f32 %v1844_v5, %v1737_v54  ;;  %v1892_v33 = vadd.f32 %v1846_v6, %v1738_v13  ;;  %v1289_v55 = vmul.f32 %v3683_v38, %v4139_v15  ;;  %v1290_v58 = vmul.f32 %v3683_v38, %v4143_v3 }
  0xda   : > { %v1291_v8 = vmul.f32 %v3683_v38, %v4165_v36  ;;  %v1363_v45 = vrot.slane %v1286_v48, 1  ;;  %v1433_v60 = vmul.f32 %v3688_v39, %v1158_v9  ;;  %v1364_v37 = vrot.slane %v1287_v18, 1 }
  0xdb   : > { %v1904_v10 = vpack.c.bf16 %v1892_v33, %v1891_v56  ;;  %v1368_v53 = vrot.slane %v1289_v55, 1  ;;  %v1434_v14 = vmul.f32 %v3688_v39, %v1159_v32  ;;  %v1369_v62 = vrot.slane %v1290_v58, 1  ;;  %v1163_v55 = vld [vmem:[%s4083_s13 + $0xe8] sm:$0x1] }
  0xdc   : > { %v1371_v1 = vrot.slane %v1291_v8, 1  ;;  %v1435_v0 = vmul.f32 %v3688_v39, %v1161_v51  ;;  %v1436_v31 = vmul.f32 %v3688_v39, %v1162_v25  ;;  %v1365_v21 = vsel %vm1322_vm1, %v1363_v45, %v1364_v37 }
  0xdd   : > { %3115 = vmatmul.mubr.msk.bf16.gmra.mrb[12].mxu0 %vm1908_vm2, %v1904_v10  ;;  %v1367_v38 = vsel %vm1322_vm1, %v1364_v37, %v1366_v7  ;;  %v1477_v24 = vmul.f32 %v3731_v16, %v1164_v12  ;;  %v1478_v47 = vmul.f32 %v3731_v16, %v1165_v44  ;;  %v1370_v26 = vsel %vm1322_vm1, %v1368_v53, %v1369_v62  ;;  %v1166_v12 = vld [vmem:[%s4083_s13 + $0x138] sm:$0xff]  ;;  %v3182_v10 = vld [vmem:[%s4724_s2 + $0x8] ss:$0 sm:$0xff] }
  0xde   : > { %v1372_v30 = vsel %vm1322_vm1, %v1369_v62, %v1371_v1  ;;  %v1409_v49 = vadd.f32 %v1365_v21, %v1254_v20  ;;  %v1410_v52 = vadd.f32 %v1367_v38, %v1255_v43  ;;  %v1411_v39 = vadd.f32 %v1370_v26, %v1256_v46  ;;  %v1149_v21 = vld [vmem:[%s4083_s13 + $0x30] sm:$0xff]  ;;  %v1150_v38 = vld [vmem:[%s4083_s13 + $0x38] sm:$0xff] }
  0xdf   : > { %v1412_v5 = vadd.f32 %v1372_v30, %v1257_v57  ;;  %v1529_v17 = vmul.f32 %v3739_v29, %v1158_v9  ;;  %v1530_v50 = vmul.f32 %v3739_v29, %v1159_v32  ;;  %v1531_v7 = vmul.f32 %v3739_v29, %v1160_v4 }
  0xe0   : > { %v1453_v11 = vadd.f32 %v1433_v60, %v1409_v49  ;;  %v1454_v59 = vadd.f32 %v1434_v14, %v1410_v52  ;;  %v1532_v54 = vmul.f32 %v3739_v29, %v1161_v51  ;;  %v1455_v13 = vadd.f32 %v1435_v0, %v1411_v39  ;;  %v1167_v51 = vld [vmem:[%s4083_s13 + $0x140] sm:$0xff]  ;;  %v1157_v49 = vld [vmem:[%s4083_s13 + $0x98] sm:$0xff] }
  0xe1   : > { %v1456_v6 = vadd.f32 %v1436_v31, %v1412_v5  ;;  %v1533_v20 = vmul.f32 %v3739_v29, %v1162_v25  ;;  %v1605_v43 = vrot.slane %v1529_v17, 1  ;;  %v1606_v48 = vrot.slane %v1530_v50, 1  ;;  %v1151_v39 = vld [vmem:[%s4083_s13 + $0x40] sm:$0x1] }
  0xe2   : > { %v1497_v46 = vadd.f32 %v1477_v24, %v1453_v11  ;;  %v1498_v57 = vadd.f32 %v1478_v47, %v1454_v59  ;;  %v1608_v9 = vrot.slane %v1531_v7, 1  ;;  %v1610_v56 = vrot.slane %v1532_v54, 1 }
  0xe3   : > { %v1611_v32 = vrot.slane %v1533_v20, 1  ;;  %v1675_v33 = vmul.f32 %v3762_v61, %v4139_v15  ;;  %v1676_v18 = vmul.f32 %v3762_v61, %v4143_v3  ;;  %v1607_v44 = vsel %vm1322_vm1, %v1605_v43, %v1606_v48 }
  0xe4   : > { %v1609_v25 = vsel %vm1322_vm1, %v1606_v48, %v1608_v9  ;;  %v1719_v58 = vmul.f32 %v3767_v63, %v4146_v2  ;;  %v1720_v8 = vmul.f32 %v3767_v63, %v4149_v42  ;;  %v1651_v45 = vadd.f32 %v1607_v44, %v1497_v46 }
  0xe5   : > { %v1652_v60 = vadd.f32 %v1609_v25, %v1498_v57  ;;  %v1771_v37 = vmul.f32 %v3182_v10, %v4139_v15  ;;  %v1772_v53 = vmul.f32 %v3182_v10, %v4143_v3  ;;  %v1773_v14 = vmul.f32 %v3182_v10, %v4165_v36  ;;  %v1156_v15 = vld [vmem:[%s4083_s13 + $0x90] sm:$0xff] }
  0xe6   : > { %v1479_v62 = vmul.f32 %v3731_v16, %v1166_v12  ;;  %v1480_v2 = vmul.f32 %v3731_v16, %v1167_v51  ;;  %v1534_v42 = vmul.f32 %v3739_v29, %v1163_v55  ;;  %v1695_v1 = vadd.f32 %v1675_v33, %v1651_v45 }
  0xe7   : > { %v1696_v0 = vadd.f32 %v1676_v18, %v1652_v60  ;;  %v1847_v31 = vrot.slane %v1771_v37, 1  ;;  %v1848_v4 = vrot.slane %v1772_v53, 1  ;;  %v1850_v24 = vrot.slane %v1773_v14, 1  ;;  %v4257_v60 = vld [vmem:[%s4726_s4] ss:$0 sm:$0xff] }
  0xe8   : > { %v1499_v47 = vadd.f32 %v1479_v62, %v1455_v13  ;;  %v1500_v3 = vadd.f32 %v1480_v2, %v1456_v6  ;;  %v1612_v36 = vsel %vm1322_vm1, %v1610_v56, %v1611_v32  ;;  %v1739_v26 = vadd.f32 %v1719_v58, %v1695_v1  ;;  %v4274_v62 = vld [vmem:[%s4727_s5] ss:$0 sm:$0xff] }
  0xe9   : > { %v1740_v30 = vadd.f32 %v1720_v8, %v1696_v0  ;;  %v1849_v16 = vsel %vm1322_vm1, %v1847_v31, %v1848_v4  ;;  %v1613_v52 = vrot.slane %v1534_v42, 1  ;;  %v1851_v29 = vsel %vm1322_vm1, %v1848_v4, %v1850_v24  ;;  %v4247_v8 = vld [vmem:[%s4728_s6] sm:$0xff] }
  0xea   : > { %v1653_v5 = vadd.f32 %v1612_v36, %v1499_v47  ;;  %v1677_v17 = vmul.f32 %v3762_v61, %v1149_v21  ;;  %v1678_v50 = vmul.f32 %v3762_v61, %v1150_v38  ;;  %v1893_v11 = vadd.f32 %v1849_v16, %v1739_v26 }
  0xeb   : > { %v1894_v59 = vadd.f32 %v1851_v29, %v1740_v30  ;;  %v1614_v7 = vsel %vm1322_vm1, %v1611_v32, %v1613_v52  ;;  %v1721_v54 = vmul.f32 %v3767_v63, %v1156_v15  ;;  %v1722_v20 = vmul.f32 %v3767_v63, %v1157_v49  ;;  %v2763_v63 = vld [vmem:[%s4729_s7] sm:$0xf] }
  0xec   : > { %v1654_v13 = vadd.f32 %v1614_v7, %v1500_v3  ;;  %v1697_v6 = vadd.f32 %v1677_v17, %v1653_v5  ;;  %v1774_v43 = vmul.f32 %v3182_v10, %v1149_v21  ;;  %v1775_v57 = vmul.f32 %v3182_v10, %v1150_v38  ;;  %3136 = vmatprep.subr.msk.bf16.mxu1 %vm2777_vm3, %v2763_v63 }
  0xed   : > { %v1905_v46 = vpack.c.bf16 %v1894_v59, %v1893_v11  ;;  %v1776_v48 = vmul.f32 %v3182_v10, %v1151_v39  ;;  %v2779_v58 = vsel %vm2777_vm3, %v2763_v63, 0  ;;  %v4252_v45 = vrot.slane %v4247_v8, %v1216_v23 }
  0xee   : > { %v1698_v9 = vadd.f32 %v1678_v50, %v1654_v13  ;;  %v1741_v56 = vadd.f32 %v1721_v54, %v1697_v6  ;;  %v1852_v33 = vrot.slane %v1774_v43, 1  ;;  %v1853_v61 = vrot.slane %v1775_v57, 1 }
  0xef   : > { %3118 = vmatprep.mubr.msk.bf16.mxu1 %vm1908_vm2, %v1905_v46  ;;  %v1855_v18 = vrot.slane %v1776_v48, 1  ;;  %v4262_v10 = vrot.slane %v4247_v8, %v1172_v22  ;;  %v2266_v37 = vmul.f32 0.0, %v4252_v45  ;;  %v4268_v53 = vrot.slane %v4247_v8, %v1260_v27 }
  0xf0   : > { %v1742_v55 = vadd.f32 %v1722_v20, %v1698_v9  ;;  %v1854_v32 = vsel %vm1322_vm1, %v1852_v33, %v1853_v61  ;;  %v2143_v23 = vadd.s32 8, %v3638_v19  ;;  %v4277_v2 = vadd.s32 4294967295, %v3638_v19 }
  0xf1   : > { %v1856_v12 = vsel %vm1322_vm1, %v1853_v61, %v1855_v18  ;;  %v1895_v51 = vadd.f32 %v1854_v32, %v1741_v56  ;;  %v2246_v1 = vmul.f32 0.0, %v4262_v10  ;;  %v2298_v0 = vrot.slane %v2266_v37, 1 }
  0xf2   : > { %v1896_v44 = vadd.f32 %v1856_v12, %v1742_v55  ;;  %v2342_v27 = vmul.f32 0.0, %v4268_v53  ;;  %v4282_v4 = vadd.s32 4294967295, %v2143_v23  ;;  %vm2176_vm4 = vcmp.ge.s32.totalorder %v4277_v2, 0 }
  0xf3   : > { %v4290_v47 = vrot.slane %v4247_v8, %v1415_v28  ;;  %v4295_v3 = vrot.slane %v4247_v8, %v1459_v34  ;;  %v2330_v26 = vadd.f32 %v2298_v0, %v2246_v1  ;;  %v4301_v16 = vrot.slane %v4247_v8, %v1503_v35 }
  0xf4   : > { %v1906_v25 = vpack.c.bf16 %v1896_v44, %v1895_v51  ;;  %v2375_v30 = vrot.slane %v2342_v27, 2  ;;  %vm2199_vm5 = vcmp.lt.s32.totalorder %v4282_v4, 8 }
  0xf6   : > { %3119 = vmatmul.mubr.msk.bf16.vlgmr.msra.gmra.mrb[0].mxu1 %vm1908_vm2, %v1906_v25  ;;  %v2407_v5 = vadd.f32 %v2375_v30, %v2330_v26  ;;  %v4346_v26 = vrot.slane %v4247_v8, %v1657_v40 }
  0xf7   : > { %3123 = vmatpush3.bf16.msra.mxu1 %v2779_v58 }
 0x164   : > { %v3104_v14 = vpop.f32.mrb[0].mxu0 }
 0x165   : > { %v2065_v22 = vmul.f32 %v3104_v14, %v4257_v60  ;;  %v1977_v42 = vpop.f32.mrb[1].mxu0 }
 0x166   : > { %v3105_v31 = vpop.f32.mrb[2].mxu0 }
 0x167   : > { %v2092_v21 = vadd.f32 %v4274_v62, %v2065_v22  ;;  %v2066_v38 = vmul.f32 %v3105_v31, %v4257_v60  ;;  %v1980_v24 = vpop.f32.mrb[3].mxu0 }
 0x168   : > { %v4337_v24 = vrot.slane %v4247_v8, %v1701_v41 }
 0x169   : > { %v2112_v15 = vmax.f32 %v2092_v21, 0.0  ;;  %v2093_v36 = vadd.f32 %v4274_v62, %v2066_v38 }
 0x16b   : > { %v2222_v28 = vsel %vm2176_vm4, %v2112_v15, 0.0  ;;  %v2113_v49 = vmax.f32 %v2093_v36, 0.0 }
 0x16c   : > { %v2268_v52 = vmul.f32 %v4252_v45, %v2222_v28  ;;  %v2344_v34 = vmul.f32 %v4268_v53, %v2222_v28  ;;  %v2439_v29 = vmul.f32 %v4295_v3, %v2222_v28  ;;  %v2419_v17 = vmul.f32 %v4290_v47, %v2222_v28 }
 0x16d   : > { %v2223_v39 = vsel %vm2199_vm5, %v2113_v49, 0.0  ;;  %v2515_v35 = vmul.f32 %v4301_v16, %v2222_v28  ;;  %v2247_v7 = vmul.f32 %v4262_v10, %v2222_v28 }
 0x16e   : > { %v2269_v50 = vmul.f32 %v4252_v45, %v2223_v39  ;;  %v2345_v11 = vmul.f32 %v4268_v53, %v2223_v39  ;;  %v2440_v59 = vmul.f32 %v4295_v3, %v2223_v39  ;;  %v2301_v54 = vrot.slane %v2268_v52, 1 }
 0x16f   : > { %v2516_v6 = vmul.f32 %v4301_v16, %v2223_v39  ;;  %v2378_v20 = vrot.slane %v2344_v34, 2  ;;  %v2471_v43 = vrot.slane %v2439_v29, 1  ;;  %v2427_v48 = vadd.f32 %v2419_v17, %v2407_v5  ;;  %v4369_v17 = vld [vmem:[%s4728_s6 + $0x8] ss:$0 sm:$0xff] }
 0x170   : > { %v2302_v13 = vrot.slane %v2269_v50, 1  ;;  %v2379_v46 = vrot.slane %v2345_v11, 2  ;;  %v2472_v57 = vrot.slane %v2440_v59, 1  ;;  %v2547_v9 = vrot.slane %v2515_v35, 2 }
 0x171   : > { %v2548_v33 = vrot.slane %v2516_v6, 2 }
 0x172   : > { %v2303_v56 = vsel %vm1322_vm1, %v2301_v54, %v2302_v13  ;;  %v2380_v18 = vsel %vm2374_vm6, %v2378_v20, %v2379_v46  ;;  %v2473_v55 = vsel %vm1322_vm1, %v2471_v43, %v2472_v57 }
 0x173   : > { %v2331_v61 = vadd.f32 %v2303_v56, %v2247_v7  ;;  %v2503_v32 = vadd.f32 %v2473_v55, %v2427_v48  ;;  %v2549_v12 = vsel %vm2374_vm6, %v2547_v9, %v2548_v33 }
 0x175   : > { %v4322_v51 = vadd.f32 %v2380_v18, %v2331_v61  ;;  %v4324_v44 = vadd.f32 %v2549_v12, %v2503_v32 }
 0x180   : > { %v3108_v25 = vpop.f32.mrb[4].mxu0 }
 0x181   : > { %v2069_v63 = vmul.f32 %v3108_v25, %v4257_v60  ;;  %v1993_v58 = vpop.f32.mrb[5].mxu0 }
 0x182   : > { %v2067_v37 = vmul.f32 %v4257_v60, %v1993_v58  ;;  %v3109_v23 = vpop.f32.mrb[6].mxu0 }
 0x183   : > { %v2096_v14 = vadd.f32 %v4274_v62, %v2069_v63  ;;  %v2070_v22 = vmul.f32 %v3109_v23, %v4257_v60  ;;  %v1996_v42 = vpop.f32.mrb[7].mxu0 }
 0x184   : > { %v2094_v1 = vadd.f32 %v4274_v62, %v2067_v37  ;;  %v2068_v0 = vmul.f32 %v4257_v60, %v1996_v42 }
 0x185   : > { %v2116_v27 = vmax.f32 %v2096_v14, 0.0  ;;  %v2097_v31 = vadd.f32 %v4274_v62, %v2070_v22 }
 0x186   : > { %v2114_v21 = vmax.f32 %v2094_v1, 0.0  ;;  %v2095_v38 = vadd.f32 %v4274_v62, %v2068_v0 }
 0x187   : > { %v4341_v15 = vsel %vm2176_vm4, %v2116_v27, 0.0  ;;  %v2117_v36 = vmax.f32 %v2097_v31, 0.0 }
 0x188   : > { %v4350_v30 = vsel %vm2176_vm4, %v2114_v21, 0.0  ;;  %v2249_v28 = vmul.f32 %v4262_v10, %v4341_v15  ;;  %v2272_v41 = vmul.f32 %v4252_v45, %v4341_v15  ;;  %v2348_v49 = vmul.f32 %v4268_v53, %v4341_v15 }
 0x189   : > { %v2227_v52 = vsel %vm2199_vm5, %v2117_v36, 0.0  ;;  %v2443_v19 = vmul.f32 %v4295_v3, %v4341_v15  ;;  %v2519_v40 = vmul.f32 %v4301_v16, %v4341_v15  ;;  %v2115_v8 = vmax.f32 %v2095_v38, 0.0 }
 0x18a   : > { %v2273_v34 = vmul.f32 %v4252_v45, %v2227_v52  ;;  %v2307_v29 = vrot.slane %v2272_v41, 1  ;;  %v2349_v39 = vmul.f32 %v4268_v53, %v2227_v52  ;;  %v2384_v5 = vrot.slane %v2348_v49, 2 }
 0x18b   : > { %v2444_v35 = vmul.f32 %v4295_v3, %v2227_v52  ;;  %v2477_v50 = vrot.slane %v2443_v19, 1  ;;  %v2520_v11 = vmul.f32 %v4301_v16, %v2227_v52  ;;  %v2553_v59 = vrot.slane %v2519_v40, 2 }
 0x18c   : > { %v2308_v7 = vrot.slane %v2273_v34, 1  ;;  %v2385_v54 = vrot.slane %v2349_v39, 2  ;;  %v4374_v13 = vmul.f32 %v4337_v24, %v2227_v52  ;;  %v4377_v6 = vmul.f32 %v4369_v17, %v2227_v52 }
 0x18d   : > { %v2478_v20 = vrot.slane %v2444_v35, 1  ;;  %v2554_v43 = vrot.slane %v2520_v11, 2  ;;  %v2225_v46 = vsel %vm2199_vm5, %v2115_v8, 0.0  ;;  %v2248_v57 = vmul.f32 %v4262_v10, %v4350_v30 }
 0x18e   : > { %v2309_v48 = vsel %vm1322_vm1, %v2307_v29, %v2308_v7  ;;  %v2386_v9 = vsel %vm2374_vm6, %v2384_v5, %v2385_v54  ;;  %v2647_v56 = vrot.slane %v4374_v13, 1  ;;  %v2723_v33 = vrot.slane %v4377_v6, 2 }
 0x18f   : > { %v2333_v61 = vadd.f32 %v2309_v48, %v2249_v28  ;;  %v4388_v18 = vsel %vm1322_vm1, %v2477_v50, %v2478_v20  ;;  %v4391_v55 = vsel %vm2374_vm6, %v2553_v59, %v2554_v43  ;;  %v2270_v32 = vmul.f32 %v4252_v45, %v4350_v30 }
 0x190   : > { %v2271_v12 = vmul.f32 %v4252_v45, %v2225_v46  ;;  %v2346_v25 = vmul.f32 %v4268_v53, %v4350_v30  ;;  %v2347_v63 = vmul.f32 %v4268_v53, %v2225_v46  ;;  %v2421_v58 = vmul.f32 %v4290_v47, %v4341_v15 }
 0x191   : > { %v4401_v37 = vadd.f32 %v2386_v9, %v2333_v61  ;;  %v2304_v23 = vrot.slane %v2270_v32, 1  ;;  %v2442_v14 = vmul.f32 %v4295_v3, %v2225_v46  ;;  %v2518_v22 = vmul.f32 %v4301_v16, %v2225_v46 }
 0x192   : > { %v2305_v42 = vrot.slane %v2271_v12, 1  ;;  %v2381_v1 = vrot.slane %v2346_v25, 2  ;;  %v2382_v0 = vrot.slane %v2347_v63, 2  ;;  %v2612_v27 = vmul.f32 %v4337_v24, %v2225_v46 }
 0x193   : > { %v2475_v31 = vrot.slane %v2442_v14, 1  ;;  %v2551_v21 = vrot.slane %v2518_v22, 2  ;;  %v2688_v38 = vmul.f32 %v4369_v17, %v2225_v46  ;;  %v2420_v36 = vmul.f32 %v4290_v47, %v4350_v30 }
 0x194   : > { %v2306_v28 = vsel %vm1322_vm1, %v2304_v23, %v2305_v42  ;;  %v2383_v41 = vsel %vm2374_vm6, %v2381_v1, %v2382_v0  ;;  %v2644_v49 = vrot.slane %v2612_v27, 1  ;;  %v2441_v52 = vmul.f32 %v4295_v3, %v4350_v30 }
 0x195   : > { %v2332_v19 = vadd.f32 %v2306_v28, %v2248_v57  ;;  %v2720_v40 = vrot.slane %v2688_v38, 2  ;;  %v2428_v8 = vadd.f32 %v2420_v36, %v4322_v51  ;;  %v2517_v34 = vmul.f32 %v4301_v16, %v4350_v30 }
 0x196   : > { %v2474_v29 = vrot.slane %v2441_v52, 1  ;;  %v2591_v39 = vmul.f32 %v4346_v26, %v4350_v30  ;;  %v2592_v5 = vmul.f32 %v4346_v26, %v4341_v15  ;;  %v2611_v35 = vmul.f32 %v4337_v24, %v4350_v30 }
 0x197   : > { %v2409_v50 = vadd.f32 %v2383_v41, %v2332_v19  ;;  %v2550_v11 = vrot.slane %v2517_v34, 2  ;;  %v2613_v59 = vmul.f32 %v4337_v24, %v4341_v15  ;;  %v2687_v51 = vmul.f32 %v4369_v17, %v4350_v30 }
 0x198   : > { %v2476_v7 = vsel %vm1322_vm1, %v2474_v29, %v2475_v31  ;;  %v2599_v54 = vadd.f32 %v2591_v39, %v4324_v44  ;;  %v2643_v13 = vrot.slane %v2611_v35, 1  ;;  %v2689_v6 = vmul.f32 %v4369_v17, %v4341_v15 }
 0x199   : > { %v2429_v20 = vadd.f32 %v2421_v58, %v2409_v50  ;;  %v3112_v43 = vpop.f32.mrb[8].mxu0  ;;  %v2504_v46 = vadd.f32 %v2476_v7, %v2428_v8  ;;  %v2552_v57 = vsel %vm2374_vm6, %v2550_v11, %v2551_v21  ;;  %v2646_v48 = vrot.slane %v2613_v59, 1 }
 0x19a   : > { %v2073_v9 = vmul.f32 %v3112_v43, %v4257_v60  ;;  %v2009_v61 = vpop.f32.mrb[9].mxu0  ;;  %v2645_v32 = vsel %vm1322_vm1, %v2643_v13, %v2644_v49  ;;  %v2719_v30 = vrot.slane %v2687_v51, 2  ;;  %v2722_v12 = vrot.slane %v2689_v6, 2 }
 0x19b   : > { %v2071_v25 = vmul.f32 %v4257_v60, %v2009_v61  ;;  %v3113_v44 = vpop.f32.mrb[10].mxu0  ;;  %v2580_v63 = vadd.f32 %v2552_v57, %v2504_v46  ;;  %v2648_v23 = vsel %vm1322_vm1, %v2646_v48, %v2647_v56  ;;  %v2675_v15 = vadd.f32 %v2645_v32, %v2599_v54 }
 0x19c   : > { %v2100_v58 = vadd.f32 %v4274_v62, %v2073_v9  ;;  %v2074_v14 = vmul.f32 %v3113_v44, %v4257_v60  ;;  %v2012_v22 = vpop.f32.mrb[11].mxu0  ;;  %v2721_v42 = vsel %vm2374_vm6, %v2719_v30, %v2720_v40  ;;  %v4439_v1 = vsel %vm2374_vm6, %v2722_v12, %v2723_v33 }
 0x19d   : > { %v2098_v0 = vadd.f32 %v4274_v62, %v2071_v25  ;;  %v2072_v27 = vmul.f32 %v4257_v60, %v2012_v22  ;;  %v2600_v31 = vadd.f32 %v2592_v5, %v2580_v63  ;;  %v4443_v21 = vadd.f32 %v2721_v42, %v2675_v15 }
 0x19e   : > { %v2120_v38 = vmax.f32 %v2100_v58, 0.0  ;;  %v2101_v56 = vadd.f32 %v4274_v62, %v2074_v14  ;;  %v2505_v36 = vadd.f32 %v4388_v18, %v2429_v20 }
 0x19f   : > { %v2118_v28 = vmax.f32 %v2098_v0, 0.0  ;;  %v2099_v41 = vadd.f32 %v4274_v62, %v2072_v27  ;;  %v2676_v49 = vadd.f32 %v2648_v23, %v2600_v31 }
 0x1a0   : > { %v4450_v33 = vsel %vm2176_vm4, %v2120_v38, 0.0  ;;  %v2121_v52 = vmax.f32 %v2101_v56, 0.0  ;;  %v2581_v19 = vadd.f32 %v4391_v55, %v2505_v36 }
 0x1a1   : > { %v4455_v40 = vsel %vm2176_vm4, %v2118_v28, 0.0  ;;  %v2276_v8 = vmul.f32 %v4252_v45, %v4450_v33  ;;  %v2352_v18 = vmul.f32 %v4268_v53, %v4450_v33  ;;  %v2119_v29 = vmax.f32 %v2099_v41, 0.0 }
 0x1a2   : > { %v2231_v34 = vsel %vm2199_vm5, %v2121_v52, 0.0  ;;  %v2274_v39 = vmul.f32 %v4252_v45, %v4455_v40  ;;  %v2251_v55 = vmul.f32 %v4262_v10, %v4450_v33  ;;  %v2250_v50 = vmul.f32 %v4262_v10, %v4455_v40 }
 0x1a3   : > { %v2277_v5 = vmul.f32 %v4252_v45, %v2231_v34  ;;  %v2353_v35 = vmul.f32 %v4268_v53, %v2231_v34  ;;  %v2313_v11 = vrot.slane %v2276_v8, 1  ;;  %v2390_v59 = vrot.slane %v2352_v18, 2 }
 0x1a4   : > { %v4472_v51 = vmul.f32 %v4295_v3, %v2231_v34  ;;  %v4475_v7 = vmul.f32 %v4301_v16, %v2231_v34  ;;  %v4478_v6 = vmul.f32 %v4337_v24, %v2231_v34  ;;  %v2229_v20 = vsel %vm2199_vm5, %v2119_v29, 0.0 }
 0x1a5   : > { %v2314_v54 = vrot.slane %v2277_v5, 1  ;;  %v2391_v13 = vrot.slane %v2353_v35, 2  ;;  %v4485_v57 = vmul.f32 %v4369_v17, %v2231_v34  ;;  %v2310_v48 = vrot.slane %v2274_v39, 1 }
 0x1a6   : > { %v2484_v43 = vrot.slane %v4472_v51, 1  ;;  %v2560_v46 = vrot.slane %v4475_v7, 2  ;;  %v2275_v32 = vmul.f32 %v4252_v45, %v2229_v20  ;;  %v2350_v30 = vmul.f32 %v4268_v53, %v4455_v40 }
 0x1a7   : > { %v2315_v9 = vsel %vm1322_vm1, %v2313_v11, %v2314_v54  ;;  %v2392_v61 = vsel %vm2374_vm6, %v2390_v59, %v2391_v13  ;;  %v2351_v25 = vmul.f32 %v4268_v53, %v2229_v20  ;;  %v2422_v44 = vmul.f32 %v4290_v47, %v4455_v40 }
 0x1a8   : > { %v2335_v12 = vadd.f32 %v2315_v9, %v2251_v55  ;;  %v2445_v63 = vmul.f32 %v4295_v3, %v4455_v40  ;;  %v2311_v23 = vrot.slane %v2275_v32, 1  ;;  %v2387_v15 = vrot.slane %v2350_v30, 2 }
 0x1a9   : > { %v2446_v58 = vmul.f32 %v4295_v3, %v2229_v20  ;;  %v2521_v14 = vmul.f32 %v4301_v16, %v4455_v40  ;;  %v2388_v42 = vrot.slane %v2351_v25, 2  ;;  %v2430_v0 = vadd.f32 %v2422_v44, %v4401_v37 }
 0x1aa   : > { %v4500_v22 = vadd.f32 %v2392_v61, %v2335_v12  ;;  %v2480_v27 = vrot.slane %v2445_v63, 1  ;;  %v2312_v31 = vsel %vm1322_vm1, %v2310_v48, %v2311_v23  ;;  %v2522_v56 = vmul.f32 %v4301_v16, %v2229_v20 }
 0x1ab   : > { %v2481_v38 = vrot.slane %v2446_v58, 1  ;;  %v2556_v36 = vrot.slane %v2521_v14, 2  ;;  %v2334_v28 = vadd.f32 %v2312_v31, %v2250_v50  ;;  %v2389_v41 = vsel %vm2374_vm6, %v2387_v15, %v2388_v42 }
 0x1ac   : > { %v2616_v52 = vmul.f32 %v4337_v24, %v2229_v20  ;;  %v2692_v8 = vmul.f32 %v4369_v17, %v2229_v20  ;;  %v2557_v34 = vrot.slane %v2522_v56, 2  ;;  %v2752_v29 = vadd.f32 %v4439_v1, %v2676_v49 }
 0x1ad   : > { %v2482_v18 = vsel %vm1322_vm1, %v2480_v27, %v2481_v38  ;;  %v2593_v37 = vmul.f32 %v4346_v26, %v4455_v40  ;;  %v2653_v39 = vrot.slane %v4478_v6, 1  ;;  %v4513_v55 = vadd.f32 %v2389_v41, %v2334_v28 }
 0x1ae   : > { %v2506_v5 = vadd.f32 %v2482_v18, %v2430_v0  ;;  %v2650_v35 = vrot.slane %v2616_v52, 1  ;;  %v2558_v50 = vsel %vm2374_vm6, %v2556_v36, %v2557_v34  ;;  %v2759_v11 = vpack.c.bf16 %v2752_v29, %v4443_v21 }
 0x1af   : > { %v2594_v59 = vmul.f32 %v4346_v26, %v4450_v33  ;;  %v2601_v54 = vadd.f32 %v2593_v37, %v2581_v19  ;;  %v2615_v1 = vmul.f32 %v4337_v24, %v4455_v40  ;;  %v2617_v49 = vmul.f32 %v4337_v24, %v4450_v33 }
 0x1b0   : > { %v3116_v13 = vpop.f32.mrb[12].mxu0  ;;  %v2582_v20 = vadd.f32 %v2558_v50, %v2506_v5  ;;  %v2691_v6 = vmul.f32 %v4369_v17, %v4455_v40  ;;  %v2729_v48 = vrot.slane %v4485_v57, 2  ;;  %v2726_v9 = vrot.slane %v2692_v8, 2  ;;  %3124 = vmatprep.mubr.msk.bf16.mxu1 %vm2764_vm7, %v2759_v11 }
 0x1b1   : > { %v2077_v21 = vmul.f32 %v3116_v13, %v4257_v60  ;;  %v2025_v61 = vpop.f32.mrb[13].mxu0  ;;  %v2693_v19 = vmul.f32 %v4369_v17, %v4450_v33  ;;  %v2649_v25 = vrot.slane %v2615_v1, 1  ;;  %v2652_v44 = vrot.slane %v2617_v49, 1 }
 0x1b2   : > { %v2075_v32 = vmul.f32 %v4257_v60, %v2025_v61  ;;  %v3117_v30 = vpop.f32.mrb[14].mxu0  ;;  %v2602_v12 = vadd.f32 %v2594_v59, %v2582_v20  ;;  %v2725_v23 = vrot.slane %v2691_v6, 2 }
 0x1b3   : > { %v2104_v63 = vadd.f32 %v4274_v62, %v2077_v21  ;;  %v2078_v40 = vmul.f32 %v3117_v30, %v4257_v60  ;;  %v2028_v57 = vpop.f32.mrb[15].mxu0  ;;  %v2728_v15 = vrot.slane %v2693_v19, 2  ;;  %v2651_v42 = vsel %vm1322_vm1, %v2649_v25, %v2650_v35 }
 0x1b4   : > { %v2102_v58 = vadd.f32 %v4274_v62, %v2075_v32  ;;  %v2076_v14 = vmul.f32 %v4257_v60, %v2028_v57  ;;  %v2654_v0 = vsel %vm1322_vm1, %v2652_v44, %v2653_v39  ;;  %v2677_v38 = vadd.f32 %v2651_v42, %v2601_v54 }
 0x1b5   : > { %v2124_v27 = vmax.f32 %v2104_v63, 0.0  ;;  %v2105_v31 = vadd.f32 %v4274_v62, %v2078_v40  ;;  %v2678_v56 = vadd.f32 %v2654_v0, %v2602_v12  ;;  %v2727_v41 = vsel %vm2374_vm6, %v2725_v23, %v2726_v9 }
 0x1b6   : > { %v2122_v36 = vmax.f32 %v2102_v58, 0.0  ;;  %v2103_v28 = vadd.f32 %v4274_v62, %v2076_v14  ;;  %v2730_v52 = vsel %vm2374_vm6, %v2728_v15, %v2729_v48  ;;  %v2753_v34 = vadd.f32 %v2727_v41, %v2677_v38 }
 0x1b7   : > { %v4543_v8 = vsel %vm2176_vm4, %v2124_v27, 0.0  ;;  %v2125_v18 = vmax.f32 %v2105_v31, 0.0  ;;  %v2754_v29 = vadd.f32 %v2730_v52, %v2678_v56  ;;  %v2423_v35 = vmul.f32 %v4290_v47, %v4450_v33 }
 0x1b8   : > { %v4547_v37 = vsel %vm2176_vm4, %v2122_v36, 0.0  ;;  %v2280_v39 = vmul.f32 %v4252_v45, %v4543_v8  ;;  %v2123_v5 = vmax.f32 %v2103_v28, 0.0  ;;  %v2253_v59 = vmul.f32 %v4262_v10, %v4543_v8 }
 0x1b9   : > { %v4555_v50 = vsel %vm2199_vm5, %v2125_v18, 0.0  ;;  %v2278_v11 = vmul.f32 %v4252_v45, %v4547_v37  ;;  %v2447_v54 = vmul.f32 %v4295_v3, %v4450_v33  ;;  %v2354_v49 = vmul.f32 %v4268_v53, %v4547_v37 }
 0x1ba   : > { %v2281_v13 = vmul.f32 %v4252_v45, %v4555_v50  ;;  %v2357_v20 = vmul.f32 %v4268_v53, %v4555_v50  ;;  %v4569_v1 = vmul.f32 %v4295_v3, %v4555_v50  ;;  %v4575_v6 = vmul.f32 %v4337_v24, %v4555_v50 }
 0x1bb   : > { %v4579_v48 = vmul.f32 %v4369_v17, %v4555_v50  ;;  %v2233_v9 = vsel %vm2199_vm5, %v2123_v5, 0.0  ;;  %v2252_v21 = vmul.f32 %v4262_v10, %v4547_v37  ;;  %v2319_v61 = vrot.slane %v2280_v39, 1 }
 0x1bc   : > { %v2320_v19 = vrot.slane %v2281_v13, 1  ;;  %v2397_v32 = vrot.slane %v2357_v20, 2  ;;  %v2279_v30 = vmul.f32 %v4252_v45, %v2233_v9  ;;  %v2490_v12 = vrot.slane %v4569_v1, 1 }
 0x1bd   : > { %v2659_v25 = vrot.slane %v4575_v6, 1  ;;  %v2735_v44 = vrot.slane %v4579_v48, 2  ;;  %v2316_v63 = vrot.slane %v2278_v11, 1  ;;  %v2355_v23 = vmul.f32 %v4268_v53, %v2233_v9 }
 0x1be   : > { %v2321_v40 = vsel %vm1322_vm1, %v2319_v61, %v2320_v19  ;;  %v2317_v57 = vrot.slane %v2279_v30, 1  ;;  %v2393_v15 = vrot.slane %v2354_v49, 2  ;;  %v2450_v10 = vmul.f32 %v4295_v3, %v2233_v9 }
 0x1bf   : > { %v2526_v58 = vmul.f32 %v4301_v16, %v2233_v9  ;;  %v2620_v14 = vmul.f32 %v4337_v24, %v2233_v9  ;;  %v2696_v45 = vmul.f32 %v4369_v17, %v2233_v9  ;;  %v2394_v0 = vrot.slane %v2355_v23, 2 }
 0x1c0   : > { %v2318_v42 = vsel %vm1322_vm1, %v2316_v63, %v2317_v57  ;;  %v2337_v27 = vadd.f32 %v2321_v40, %v2253_v59  ;;  %v2356_v31 = vmul.f32 %v4268_v53, %v4543_v8  ;;  %v2487_v56 = vrot.slane %v2450_v10, 1 }
 0x1c1   : > { %v2336_v38 = vadd.f32 %v2318_v42, %v2252_v21  ;;  %v2563_v36 = vrot.slane %v2526_v58, 2  ;;  %v2656_v28 = vrot.slane %v2620_v14, 1  ;;  %v2395_v41 = vsel %vm2374_vm6, %v2393_v15, %v2394_v0 }
 0x1c2   : > { %v2732_v52 = vrot.slane %v2696_v45, 2  ;;  %v2396_v18 = vrot.slane %v2356_v31, 2  ;;  %v2760_v39 = vpack.c.bf16 %v2754_v29, %v2753_v34  ;;  %v2424_v11 = vmul.f32 %v4290_v47, %v4547_v37 }
 0x1c3   : > { %v2413_v5 = vadd.f32 %v2395_v41, %v2336_v38  ;;  %v2431_v13 = vadd.f32 %v2423_v35, %v4513_v55  ;;  %v2449_v59 = vmul.f32 %v4295_v3, %v4547_v37  ;;  %v2483_v20 = vrot.slane %v2447_v54, 1 }
 0x1c4   : > { %v2398_v53 = vsel %vm2374_vm6, %v2396_v18, %v2397_v32  ;;  %3125 = vmatmul.mubr.msk.bf16.vlgmr.msra.gmra.mrb[4].mxu1 %vm2764_vm7, %v2760_v39  ;;  %v2523_v49 = vmul.f32 %v4301_v16, %v4450_v33  ;;  %v2525_v34 = vmul.f32 %v4301_v16, %v4547_v37  ;;  %v2432_v9 = vadd.f32 %v2424_v11, %v4500_v22 }
 0x1c5   : > { %v2414_v29 = vadd.f32 %v2398_v53, %v2337_v27  ;;  %v2486_v21 = vrot.slane %v2449_v59, 1  ;;  %v2595_v55 = vmul.f32 %v4346_v26, %v4547_v37  ;;  %v2485_v35 = vsel %vm1322_vm1, %v2483_v20, %v2484_v43 }
 0x1c6   : > { %v2559_v61 = vrot.slane %v2523_v49, 2  ;;  %v2562_v19 = vrot.slane %v2525_v34, 2  ;;  %v2596_v54 = vmul.f32 %v4346_v26, %v4543_v8  ;;  %v2507_v32 = vadd.f32 %v2485_v35, %v2431_v13 }
 0x1c7   : > { %v2488_v33 = vsel %vm1322_vm1, %v2486_v21, %v2487_v56  ;;  %v2619_v30 = vmul.f32 %v4337_v24, %v4547_v37  ;;  %v2621_v22 = vmul.f32 %v4337_v24, %v4543_v8  ;;  %v2695_v40 = vmul.f32 %v4369_v17, %v4547_v37 }
 0x1c8   : > { %v2508_v63 = vadd.f32 %v2488_v33, %v2432_v9  ;;  %v2561_v51 = vsel %vm2374_vm6, %v2559_v61, %v2560_v46  ;;  %v2564_v43 = vsel %vm2374_vm6, %v2562_v19, %v2563_v36  ;;  %v2697_v58 = vmul.f32 %v4369_v17, %v4543_v8 }
 0x1c9   : > { %v3120_v57 = vpop.f32.mrb[0].mxu1  ;;  %v2583_v23 = vadd.f32 %v2561_v51, %v2507_v32  ;;  %v2655_v15 = vrot.slane %v2619_v30, 1  ;;  %v2658_v10 = vrot.slane %v2621_v22, 1  ;;  %v2731_v42 = vrot.slane %v2695_v40, 2 }
 0x1ca   : > { %v2041_v14 = vpop.f32.mrb[1].mxu1  ;;  %v2584_v45 = vadd.f32 %v2564_v43, %v2508_v63  ;;  %v2425_v7 = vmul.f32 %v4290_v47, %v4543_v8  ;;  %v2451_v46 = vmul.f32 %v4295_v3, %v4543_v8  ;;  %v2734_v18 = vrot.slane %v2697_v58, 2 }
 0x1cb   : > { %v2079_v0 = vmul.f32 %v4257_v60, %v2041_v14  ;;  %v3121_v27 = vpop.f32.mrb[2].mxu1  ;;  %v2603_v37 = vadd.f32 %v2595_v55, %v2583_v23  ;;  %v2657_v31 = vsel %vm1322_vm1, %v2655_v15, %v2656_v28  ;;  %v2660_v38 = vsel %vm1322_vm1, %v2658_v10, %v2659_v25 }
 0x1cc   : > { %v2044_v56 = vpop.f32.mrb[3].mxu1  ;;  %v2604_v36 = vadd.f32 %v2596_v54, %v2584_v45  ;;  %v2733_v41 = vsel %vm2374_vm6, %v2731_v42, %v2732_v52  ;;  %v2433_v39 = vadd.f32 %v2425_v7, %v2413_v5  ;;  %v2489_v53 = vrot.slane %v2451_v46, 1 }
 0x1cd   : > { %v2106_v11 = vadd.f32 %v4274_v62, %v2079_v0  ;;  %v2080_v13 = vmul.f32 %v4257_v60, %v2044_v56  ;;  %v2679_v59 = vadd.f32 %v2657_v31, %v2603_v37  ;;  %v2528_v20 = vmul.f32 %v4301_v16, %v4555_v50 }
 0x1ce   : > { %v2680_v28 = vadd.f32 %v2660_v38, %v2604_v36  ;;  %v2736_v6 = vsel %vm2374_vm6, %v2734_v18, %v2735_v44  ;;  %v2491_v5 = vsel %vm1322_vm1, %v2489_v53, %v2490_v12  ;;  %v2527_v9 = vmul.f32 %v4301_v16, %v4543_v8 }
 0x1cf   : > { %v2126_v25 = vmax.f32 %v2106_v11, 0.0  ;;  %v2107_v49 = vadd.f32 %v4274_v62, %v2080_v13  ;;  %v2755_v52 = vadd.f32 %v2733_v41, %v2679_v59  ;;  %v2509_v60 = vadd.f32 %v2491_v5, %v2433_v39  ;;  %v3080_v41 = vld [vmem:[%s4731_s9] ss:$0 sm:$0xff] }
 0x1d0   : > { %v2756_v34 = vadd.f32 %v2736_v6, %v2680_v28  ;;  %v2625_v48 = vmul.f32 0.0, %v4337_v24  ;;  %v2566_v44 = vrot.slane %v2528_v20, 2  ;;  %v2565_v33 = vrot.slane %v2527_v9, 2 }
 0x1d1   : > { %v2236_v50 = vsel %vm2176_vm4, %v2126_v25, 0.0  ;;  %v2127_v21 = vmax.f32 %v2107_v49, 0.0 }
 0x1d2   : > { %v2426_v55 = vmul.f32 %v4290_v47, %v2236_v50  ;;  %v2453_v62 = vmul.f32 %v4295_v3, %v2236_v50  ;;  %v2529_v1 = vmul.f32 %v4301_v16, %v2236_v50  ;;  %v2623_v12 = vmul.f32 %v4337_v24, %v2236_v50 }
 0x1d3   : > { %v2699_v35 = vmul.f32 %v4369_v17, %v2236_v50  ;;  %v2237_v8 = vsel %vm2199_vm5, %v2127_v21, 0.0  ;;  %v2761_v61 = vpack.c.bf16 %v2756_v34, %v2755_v52  ;;  %v2567_v4 = vsel %vm2374_vm6, %v2565_v33, %v2566_v44 }
 0x1d4   : > { %v2434_v2 = vadd.f32 %v2426_v55, %v2414_v29  ;;  %v2492_v19 = vrot.slane %v2453_v62, 1  ;;  %v2454_v54 = vmul.f32 %v4295_v3, %v2237_v8  ;;  %v2568_v32 = vrot.slane %v2529_v1, 2 }
 0x1d5   : > { %v2661_v30 = vrot.slane %v2623_v12, 1  ;;  %v2530_v47 = vmul.f32 %v4301_v16, %v2237_v8  ;;  %v2624_v22 = vmul.f32 %v4337_v24, %v2237_v8  ;;  %3128 = vmatprep.mubr.msk.bf16.mxu1 %vm2764_vm7, %v2761_v61  ;;  %v2737_v63 = vrot.slane %v2699_v35, 2 }
 0x1d6   : > { %v2493_v51 = vrot.slane %v2454_v54, 1  ;;  %v2700_v43 = vmul.f32 %v4369_v17, %v2237_v8  ;;  %v2597_v29 = vmul.f32 %v4346_v26, %v2236_v50  ;;  %v2585_v3 = vadd.f32 %v2567_v4, %v2509_v60 }
 0x1d7   : > { %v2569_v40 = vrot.slane %v2530_v47, 2  ;;  %v2662_v57 = vrot.slane %v2624_v22, 1  ;;  %v2598_v16 = vmul.f32 0.0, %v4346_v26  ;;  %v2701_v24 = vmul.f32 0.0, %v4369_v17  ;;  %v3079_v17 = vld [vmem:[%s4730_s8] ss:$0 sm:$0xff] }
 0x1d8   : > { %v2494_v23 = vsel %vm1322_vm1, %v2492_v19, %v2493_v51  ;;  %v2738_v15 = vrot.slane %v2700_v43, 2  ;;  %v2605_v14 = vadd.f32 %v2597_v29, %v2585_v3  ;;  %v2664_v46 = vrot.slane %v2625_v48, 1 }
 0x1d9   : > { %v2510_v10 = vadd.f32 %v2494_v23, %v2434_v2  ;;  %v2570_v58 = vsel %vm2374_vm6, %v2568_v32, %v2569_v40  ;;  %v2663_v45 = vsel %vm1322_vm1, %v2661_v30, %v2662_v57  ;;  %v2740_v37 = vrot.slane %v2701_v24, 2 }
 0x1da   : > { %v2739_v42 = vsel %vm2374_vm6, %v2737_v63, %v2738_v15  ;;  %v2681_v0 = vadd.f32 %v2663_v45, %v2605_v14 }
 0x1db   : > { %v2586_v7 = vadd.f32 %v2570_v58, %v2510_v10 }
 0x1dc   : > { %v2757_v31 = vadd.f32 %v2739_v42, %v2681_v0 }
 0x1dd   : > { %v2606_v27 = vadd.f32 %v2598_v16, %v2586_v7 }
 0x1df   : > { %v2682_v38 = vadd.f32 %v2664_v46, %v2606_v27 }
 0x1e1   : > { %v2758_v26 = vadd.f32 %v2740_v37, %v2682_v38 }
 0x1e3   : > { %v2762_v56 = vpack.c.bf16 %v2758_v26, %v2757_v31 }
 0x1e5   : > { %3129 = vmatmul.mubr.msk.bf16.gmra.mrb[8].mxu1 %vm2764_vm7, %v2762_v56 }
 0x297   : > { %v3126_v36 = vpop.f32.mrb[4].mxu1 }
 0x298   : > { %v2855_v18 = vmul.f32 %v3126_v36, %v3079_v17  ;;  %v2815_v39 = vpop.f32.mrb[5].mxu1 }
 0x299   : > { %v2853_v11 = vmul.f32 %v3079_v17, %v2815_v39  ;;  %v3127_v13 = vpop.f32.mrb[6].mxu1 }
 0x29a   : > { %v2870_v59 = vadd.f32 %v3080_v41, %v2855_v18  ;;  %v2856_v53 = vmul.f32 %v3127_v13, %v3079_v17  ;;  %v2818_v20 = vpop.f32.mrb[7].mxu1 }
 0x29b   : > { %v2868_v28 = vadd.f32 %v3080_v41, %v2853_v11  ;;  %v2854_v6 = vmul.f32 %v3079_v17, %v2818_v20 }
 0x29c   : > { %v2878_v25 = vmax.f32 %v2870_v59, 0.0  ;;  %v2871_v49 = vadd.f32 %v3080_v41, %v2856_v53 }
 0x29d   : > { %v2876_v52 = vmax.f32 %v2868_v28, 0.0  ;;  %v2869_v5 = vadd.f32 %v3080_v41, %v2854_v6 }
 0x29e   : > { %2886 = vst.msk [vmem:[%s4689_s26 + $0x10] sm:$0xff] %vm2764_vm7, %v2878_v25  ;;  %v2879_v34 = vmax.f32 %v2871_v49, 0.0 }
 0x29f   : > { %2884 = vst.msk [vmem:[%s4689_s26] sm:$0xff] %vm2764_vm7, %v2876_v52  ;;  %v2877_v60 = vmax.f32 %v2869_v5, 0.0 }
 0x2a0   : > { %2887 = vst.msk [vmem:[%s4689_s26 + $0x18] sm:$0xff] %vm2764_vm7, %v2879_v34 }
 0x2a1   : > { %2885 = vst.msk [vmem:[%s4689_s26 + $0x8] sm:$0xff] %vm2764_vm7, %v2877_v60 }
 0x2b8   : > { %v3130_v9 = vpop.f32.mrb[8].mxu1 }
 0x2b9   : > { %v2859_v50 = vmul.f32 %v3130_v9, %v3079_v17  ;;  %v2831_v21 = vpop.f32.mrb[9].mxu1 }
 0x2ba   : > { %v2857_v48 = vmul.f32 %v3079_v17, %v2831_v21  ;;  %v3131_v44 = vpop.f32.mrb[10].mxu1 }
 0x2bb   : > { %v2874_v55 = vadd.f32 %v3080_v41, %v2859_v50  ;;  %v2860_v62 = vmul.f32 %v3131_v44, %v3079_v17  ;;  %v2834_v1 = vpop.f32.mrb[11].mxu1 }
 0x2bc   : > { %v2872_v12 = vadd.f32 %v3080_v41, %v2857_v48  ;;  %v2858_v35 = vmul.f32 %v3079_v17, %v2834_v1 }
 0x2bd   : > { %v2882_v8 = vmax.f32 %v2874_v55, 0.0  ;;  %v2875_v61 = vadd.f32 %v3080_v41, %v2860_v62 }
 0x2be   : > { %v2880_v2 = vmax.f32 %v2872_v12, 0.0  ;;  %v2873_v19 = vadd.f32 %v3080_v41, %v2858_v35 }
 0x2bf   : > { %2890 = vst.msk [vmem:[%s4689_s26 + $0x30] sm:$0xff] %vm2764_vm7, %v2882_v8  ;;  %v2883_v54 = vmax.f32 %v2875_v61, 0.0 }
 0x2c0   : > { %2888 = vst.msk [vmem:[%s4689_s26 + $0x20] sm:$0xff] %vm2764_vm7, %v2880_v2  ;;  %v2881_v33 = vmax.f32 %v2873_v19, 0.0 }
 0x2c1   : > { %2891 = vst.msk [vmem:[%s4689_s26 + $0x38] sm:$0xff] %vm2764_vm7, %v2883_v54 }
 0x2c2   : > { %2889 = vst.msk [vmem:[%s4689_s26 + $0x28] sm:$0xff] %vm2764_vm7, %v2881_v33 }
 0x2c3 PF: > { %s20_s17 = sadd.s32 1, %s3221_s17   ;;  %s4734_s13 = smov %s3209_s14 }
 0x2c4   : > { %p17_p10 = scmp.ge.s32.totalorder %s20_s17, 4   ;;  %s4735_s14 = smov %s3317_s22 }
 0x2c5   : > { %s4736_s15 = smov %s3217_s16  ;;  %s4737_s16 = smov %s4739_s18 }
 0x2c6   :  { %19 = sbr.rel (!%p17_p10) target bundleno = 3 (0x3), region = 179 }

</bundles_post_ra>
